<compile_context>
chip_gen: v7x
topology: tpu7x:2x2x1
jax: 0.10.0
libtpu: 0.0.40
codegen_flags: <defaults>
</compile_context>

<pallas_src>
import functools
import math

import jax
import jax.numpy as jnp
from jax.experimental import pallas as pl
from jax.experimental.pallas import tpu as pltpu

LN_EPS = 1e-12  # XLMConfig(layer_norm_eps=1e-12)


# ----------------------------------------------------------------------------
# In-kernel helpers (traced inside the Pallas body)
# ----------------------------------------------------------------------------
def _layernorm(x, gamma, beta, eps=LN_EPS):
    mu = jnp.mean(x, axis=-1, keepdims=True)
    var = jnp.mean((x - mu) ** 2, axis=-1, keepdims=True)
    return (x - mu) * jax.lax.rsqrt(var + eps) * gamma + beta


def _gelu_exact(x):
    # XLM gelu: x * 0.5 * (1 + erf(x / sqrt(2)))
    return 0.5 * x * (1.0 + jax.lax.erf(x * (1.0 / math.sqrt(2.0))))


# ----------------------------------------------------------------------------
# Fused forward kernel: embed (l==0) -> encoder layer l -> reg head (l==L-1)
# ----------------------------------------------------------------------------
def fused_forward_kernel(
        # data (constant across the layer grid)
        cate_ref, cont_ref, pos_ref, mrow_ref, mtok_ref, sel_ref,
        # embedding-projection params
        cw, cb, cg, cbe, nw, nb, ng, nbe, eg, ebe,
        # per-layer encoder params (blocked over grid axis 0)
        wq, bq, wk, bk, wv, bv, wo, bo,
        g1, be1, wf1, bf1, wf2, bf2, g2, be2,
        # reg-head params
        rw1, rb1, rg, rbe, rw2, rb2,
        # output
        pred_ref,
        # scratch (persists across grid steps)
        x_acc, ctx_acc,
        *, n_heads, batch, seq_len):
    l = pl.program_id(0)
    n_layers = pl.num_programs(0)
    ntok, hidden = x_acc.shape
    half = hidden // 2
    dh = hidden // n_heads
    bf16 = jnp.bfloat16
    f32 = jnp.float32

    mtok = mtok_ref[...]                                   # (N, 1) token mask

    # ---- grid step 0: cate_proj / cont_emb -> +pos -> layer_norm_emb -> mask ----
    @pl.when(l == 0)
    def _embed():
        cate_h = _layernorm(
            jnp.dot(cate_ref[...].astype(bf16), cw[...],
                    preferred_element_type=f32) + cb[...],
            cg[...], cbe[...])
        cont_h = _layernorm(
            jnp.dot(cont_ref[...].astype(bf16), nw[...],
                    preferred_element_type=f32) + nb[...],
            ng[...], nbe[...])
        # write both halves straight into the resident activation slab (no concat)
        x_acc[:, :half] = cate_h
        x_acc[:, half:] = cont_h
        emb = x_acc[...].reshape(batch, seq_len, hidden) + pos_ref[...]  # bcast pos
        emb = _layernorm(emb, eg[...], ebe[...])
        x_acc[...] = emb.reshape(ntok, hidden) * mtok      # tensor *= mask

    # ---- XLM encoder layer l (layer-l weights streamed by BlockSpec) ----
    x = x_acc[...]                                         # (N, H) f32, VMEM-resident
    xb = x.astype(bf16)
    q = jnp.dot(xb, wq[0], preferred_element_type=f32) + bq[0]
    k = jnp.dot(xb, wk[0], preferred_element_type=f32) + bk[0]
    v = jnp.dot(xb, wv[0], preferred_element_type=f32) + bv[0]
    q3 = q.reshape(batch, seq_len, hidden).astype(bf16)
    k3 = k.reshape(batch, seq_len, hidden).astype(bf16)
    v3 = v.reshape(batch, seq_len, hidden).astype(bf16)

    scale = 1.0 / math.sqrt(dh)
    neg = float(jnp.finfo(jnp.float32).min)
    key_is_pad = mrow_ref[...] == 0.0                      # (B, 1, S) key mask

    for h in range(n_heads):                               # static, small n_heads
        cols = slice(h * dh, (h + 1) * dh)
        sc = jnp.einsum('bqd,bkd->bqk', q3[:, :, cols], k3[:, :, cols],
                        preferred_element_type=f32) * scale
        sc = jnp.where(key_is_pad, neg, sc)                # masked_fill on keys
        m = jnp.max(sc, axis=-1, keepdims=True)
        e = jnp.exp(sc - m)
        p = e * pl.reciprocal(jnp.sum(e, axis=-1, keepdims=True), approx=True)
        # per-head context written into the packed slab (no concatenate)
        ctx_acc[:, :, cols] = jnp.einsum('bqk,bkd->bqd', p.astype(bf16),
                                         v3[:, :, cols],
                                         preferred_element_type=f32)

    ctx = ctx_acc[...].reshape(ntok, hidden)
    attn = jnp.dot(ctx.astype(bf16), wo[0], preferred_element_type=f32) + bo[0]
    x1 = _layernorm(x + attn, g1[0], be1[0])               # layer_norm1
    hmid = _gelu_exact(jnp.dot(x1.astype(bf16), wf1[0],
                               preferred_element_type=f32) + bf1[0])
    ff = jnp.dot(hmid.astype(bf16), wf2[0], preferred_element_type=f32) + bf2[0]
    x2 = _layernorm(x1 + ff, g2[0], be2[0])                # layer_norm2
    x_acc[...] = x2 * mtok                                 # tensor *= mask

    # ---- last grid step: last-token select + reg head; only HBM store ----
    @pl.when(l == n_layers - 1)
    def _reg():
        # last-token gather expressed as a tiny one-hot matmul (layout-safe)
        x_last = jnp.dot(sel_ref[...], x_acc[...], preferred_element_type=f32)
        hreg = jnp.dot(x_last.astype(bf16), rw1[...],
                       preferred_element_type=f32) + rb1[...]
        hreg = _layernorm(hreg, rg[...], rbe[...])
        hreg = jnp.maximum(hreg, 0.0)
        pred_ref[...] = jnp.dot(hreg.astype(bf16), rw2[...],
                                preferred_element_type=f32) + rb2[...]


# ----------------------------------------------------------------------------
# Full forward (glue: embedding gather, cheap reshapes, one pallas_call)
# ----------------------------------------------------------------------------
def dsb_xlm_forward(params, cate_x, cont_x, mask, cfg):
    B, S, Cc = cate_x.shape
    H = cfg.hidden_size
    N = B * S
    L = params['wq'].shape[0]
    T = params['reg_w2'].shape[1]

    # Embedding lookup (gather) kept in plain JAX; padding_idx=0 row is zero.
    cate_e = params['cate_emb'][cate_x]                        # (B, S, Cc, E)
    cate_flat = cate_e.reshape(N, Cc * cfg.emb_size)           # (N, Cc*E)
    cont_flat = cont_x.reshape(N, -1).astype(jnp.float32)      # (N, Cn)
    mask_f = mask.astype(jnp.float32)
    mask_row = mask_f.reshape(B, 1, S)                         # key mask
    mask_tok = mask_f.reshape(N, 1)                            # token mask
    last_idx = jnp.arange(B) * S + (S - 1)                     # one-hot selector
    last_sel = (jnp.arange(N)[None, :] == last_idx[:, None]).astype(jnp.float32)

    const_args = (cate_flat, cont_flat, params['pos_emb'], mask_row, mask_tok, last_sel,
                  params['cate_w'], params['cate_b'], params['cate_g'], params['cate_be'],
                  params['cont_w'], params['cont_b'], params['cont_g'], params['cont_be'],
                  params['embln_g'], params['embln_be'])
    layer_args = (params['wq'], params['bq'], params['wk'], params['bk'],
                  params['wv'], params['bv'], params['wo'], params['bo'],
                  params['g1'], params['be1'], params['wf1'], params['bf1'],
                  params['wf2'], params['bf2'], params['g2'], params['be2'])
    head_args = (params['reg_w1'], params['reg_b1'], params['reg_g'], params['reg_be'],
                 params['reg_w2'], params['reg_b2'])

    def const_spec(a):
        nd = a.ndim                      # full-array block, fetched once (block idx
        return pl.BlockSpec(a.shape, lambda l, _nd=nd: (0,) * _nd)   # never changes)

    def layer_spec(a):
        tail = tuple(a.shape[1:])        # stream layer l's slice each grid step
        nz = len(tail)
        return pl.BlockSpec((1,) + tail, lambda l, _nz=nz: (l,) + (0,) * _nz)

    in_specs = ([const_spec(a) for a in const_args]
                + [layer_spec(a) for a in layer_args]
                + [const_spec(a) for a in head_args])

    kernel = functools.partial(fused_forward_kernel, n_heads=cfg.nheads,
                               batch=B, seq_len=S)
    return pl.pallas_call(
        kernel,
        grid=(L,),
        in_specs=in_specs,
        out_specs=pl.BlockSpec((B, T), lambda l: (0, 0)),
        out_shape=jax.ShapeDtypeStruct((B, T), jnp.float32),
        scratch_shapes=[pltpu.VMEM((N, H), jnp.float32),      # resident activations
                        pltpu.VMEM((B, S, H), jnp.float32)],  # packed attention ctx
        compiler_params=pltpu.CompilerParams(
            dimension_semantics=("arbitrary",)),               # layers are sequential
    )(*const_args, *layer_args, *head_args)


# ----------------------------------------------------------------------------
# Deterministic parameter construction (weight matrices bf16, vectors/LN f32)
# ----------------------------------------------------------------------------
def init_params(key, cfg):
    H = cfg.hidden_size
    Hh = H // 2
    E = cfg.emb_size
    Cc = len(cfg.cate_cols)
    Cn = len(cfg.cont_cols)
    F4 = 4 * H
    T = cfg.target_size
    L = cfg.nlayers

    keys = jax.random.split(key, 16)
    kit = iter(keys)

    def nrm(shape, std=0.02, dtype=jnp.bfloat16):
        return (jax.random.normal(next(kit), shape, jnp.float32) * std).astype(dtype)

    def vec(d, val=0.0):
        return jnp.full((1, d), val, jnp.float32)

    def lvec(d, val=0.0):
        return jnp.full((L, 1, d), val, jnp.float32)

    cate_emb = nrm((cfg.total_cate_size, E), std=E ** -0.5, dtype=jnp.float32)
    cate_emb = cate_emb.at[0].set(0.0)                    # padding_idx=0

    return dict(
        cate_emb=cate_emb,
        cate_w=nrm((E * Cc, Hh)), cate_b=vec(Hh), cate_g=vec(Hh, 1.0), cate_be=vec(Hh),
        cont_w=nrm((Cn, Hh)), cont_b=vec(Hh), cont_g=vec(Hh, 1.0), cont_be=vec(Hh),
        pos_emb=nrm((cfg.seq_len, H), std=H ** -0.5, dtype=jnp.float32),
        embln_g=vec(H, 1.0), embln_be=vec(H),
        # stacked per-layer encoder weights: (L, ...)
        wq=nrm((L, H, H)), bq=lvec(H),
        wk=nrm((L, H, H)), bk=lvec(H),
        wv=nrm((L, H, H)), bv=lvec(H),
        wo=nrm((L, H, H)), bo=lvec(H),
        g1=lvec(H, 1.0), be1=lvec(H),
        wf1=nrm((L, H, F4)), bf1=lvec(F4),
        wf2=nrm((L, F4, H)), bf2=lvec(H),
        g2=lvec(H, 1.0), be2=lvec(H),
        # reg head
        reg_w1=nrm((H, H)), reg_b1=vec(H),
        reg_g=vec(H, 1.0), reg_be=vec(H),
        reg_w2=nrm((H, T)), reg_b2=vec(T),
    )


# ----------------------------------------------------------------------------
class Cfg:
    cate_cols = ['a', 'b', 'c']          # 3 categorical columns
    cont_cols = ['p', 'q', 'r', 's']     # 4 continuous columns
    total_cate_size = 16
    emb_size = 8
    hidden_size = 32
    nlayers = 2
    nheads = 2
    seq_len = 8
    dropout = 0.1
    target_size = 3


if __name__ == "__main__":
    cfg = Cfg()
    key = jax.random.PRNGKey(0)
    pkey, k_cate, k_cont = jax.random.split(key, 3)
    params = init_params(pkey, cfg)

    B = 2
    cate_x = jax.random.randint(k_cate, (B, cfg.seq_len, len(cfg.cate_cols)),
                                0, cfg.total_cate_size)
    cont_x = jax.random.normal(k_cont, (B, cfg.seq_len, len(cfg.cont_cols)), jnp.float32)
    mask = jnp.ones((B, cfg.seq_len), jnp.float32)
    mask = mask.at[1, :2].set(0.0)       # some padded positions in batch 1

    y = dsb_xlm_forward(params, cate_x, cont_x, mask, cfg)
    y = jax.block_until_ready(y)

    assert y.shape == (B, cfg.target_size), y.shape
    assert bool(jnp.all(jnp.isfinite(y)))
    print("KERNEL_OK")
</pallas_src>

<mosaic_0001>
module attributes {stable_mosaic.version = 11 : i64} {
  func.func @fused_forward_kernel(%arg0: i32, %arg1: memref<16x24xf32, #tpu.memory_space<vmem>>, %arg2: memref<16x4xf32, #tpu.memory_space<vmem>>, %arg3: memref<8x32xf32, #tpu.memory_space<vmem>>, %arg4: memref<2x1x8xf32, #tpu.memory_space<vmem>>, %arg5: memref<16x1xf32, #tpu.memory_space<vmem>>, %arg6: memref<2x16xf32, #tpu.memory_space<vmem>>, %arg7: memref<24x16xbf16, #tpu.memory_space<vmem>>, %arg8: memref<1x16xf32, #tpu.memory_space<vmem>>, %arg9: memref<1x16xf32, #tpu.memory_space<vmem>>, %arg10: memref<1x16xf32, #tpu.memory_space<vmem>>, %arg11: memref<4x16xbf16, #tpu.memory_space<vmem>>, %arg12: memref<1x16xf32, #tpu.memory_space<vmem>>, %arg13: memref<1x16xf32, #tpu.memory_space<vmem>>, %arg14: memref<1x16xf32, #tpu.memory_space<vmem>>, %arg15: memref<1x32xf32, #tpu.memory_space<vmem>>, %arg16: memref<1x32xf32, #tpu.memory_space<vmem>>, %arg17: memref<1x32x32xbf16, #tpu.memory_space<vmem>>, %arg18: memref<1x1x32xf32, #tpu.memory_space<vmem>>, %arg19: memref<1x32x32xbf16, #tpu.memory_space<vmem>>, %arg20: memref<1x1x32xf32, #tpu.memory_space<vmem>>, %arg21: memref<1x32x32xbf16, #tpu.memory_space<vmem>>, %arg22: memref<1x1x32xf32, #tpu.memory_space<vmem>>, %arg23: memref<1x32x32xbf16, #tpu.memory_space<vmem>>, %arg24: memref<1x1x32xf32, #tpu.memory_space<vmem>>, %arg25: memref<1x1x32xf32, #tpu.memory_space<vmem>>, %arg26: memref<1x1x32xf32, #tpu.memory_space<vmem>>, %arg27: memref<1x32x128xbf16, #tpu.memory_space<vmem>>, %arg28: memref<1x1x128xf32, #tpu.memory_space<vmem>>, %arg29: memref<1x128x32xbf16, #tpu.memory_space<vmem>>, %arg30: memref<1x1x32xf32, #tpu.memory_space<vmem>>, %arg31: memref<1x1x32xf32, #tpu.memory_space<vmem>>, %arg32: memref<1x1x32xf32, #tpu.memory_space<vmem>>, %arg33: memref<32x32xbf16, #tpu.memory_space<vmem>>, %arg34: memref<1x32xf32, #tpu.memory_space<vmem>>, %arg35: memref<1x32xf32, #tpu.memory_space<vmem>>, %arg36: memref<1x32xf32, #tpu.memory_space<vmem>>, %arg37: memref<32x3xbf16, #tpu.memory_space<vmem>>, %arg38: memref<1x3xf32, #tpu.memory_space<vmem>>, %arg39: memref<2x3xf32, #tpu.memory_space<vmem>>, %arg40: memref<16x32xf32, #tpu.memory_space<vmem>>, %arg41: memref<2x8x32xf32, #tpu.memory_space<vmem>>) attributes {dimension_semantics = [#tpu.dimension_semantics<arbitrary>], iteration_bounds = array<i64: 2>, scalar_prefetch = 0 : i64, scratch_operands = 2 : i64, tpu.core_type = #tpu.core_type<tc>, window_params = [{pipeline_mode = #tpu.pipeline_mode<synchronous>, transform_indices = @transform_0, window_bounds = array<i64: 16, 24>}, {pipeline_mode = #tpu.pipeline_mode<synchronous>, transform_indices = @transform_1, window_bounds = array<i64: 16, 4>}, {pipeline_mode = #tpu.pipeline_mode<synchronous>, transform_indices = @transform_2, window_bounds = array<i64: 8, 32>}, {pipeline_mode = #tpu.pipeline_mode<synchronous>, transform_indices = @transform_3, window_bounds = array<i64: 2, 1, 8>}, {pipeline_mode = #tpu.pipeline_mode<synchronous>, transform_indices = @transform_4, window_bounds = array<i64: 16, 1>}, {pipeline_mode = #tpu.pipeline_mode<synchronous>, transform_indices = @transform_5, window_bounds = array<i64: 2, 16>}, {pipeline_mode = #tpu.pipeline_mode<synchronous>, transform_indices = @transform_6, window_bounds = array<i64: 24, 16>}, {pipeline_mode = #tpu.pipeline_mode<synchronous>, transform_indices = @transform_7, window_bounds = array<i64: 1, 16>}, {pipeline_mode = #tpu.pipeline_mode<synchronous>, transform_indices = @transform_8, window_bounds = array<i64: 1, 16>}, {pipeline_mode = #tpu.pipeline_mode<synchronous>, transform_indices = @transform_9, window_bounds = array<i64: 1, 16>}, {pipeline_mode = #tpu.pipeline_mode<synchronous>, transform_indices = @transform_10, window_bounds = array<i64: 4, 16>}, {pipeline_mode = #tpu.pipeline_mode<synchronous>, transform_indices = @transform_11, window_bounds = array<i64: 1, 16>}, {pipeline_mode = #tpu.pipeline_mode<synchronous>, transform_indices = @transform_12, window_bounds = array<i64: 1, 16>}, {pipeline_mode = #tpu.pipeline_mode<synchronous>, transform_indices = @transform_13, window_bounds = array<i64: 1, 16>}, {pipeline_mode = #tpu.pipeline_mode<synchronous>, transform_indices = @transform_14, window_bounds = array<i64: 1, 32>}, {pipeline_mode = #tpu.pipeline_mode<synchronous>, transform_indices = @transform_15, window_bounds = array<i64: 1, 32>}, {transform_indices = @transform_16, window_bounds = array<i64: 1, 32, 32>}, {transform_indices = @transform_17, window_bounds = array<i64: 1, 1, 32>}, {transform_indices = @transform_18, window_bounds = array<i64: 1, 32, 32>}, {transform_indices = @transform_19, window_bounds = array<i64: 1, 1, 32>}, {transform_indices = @transform_20, window_bounds = array<i64: 1, 32, 32>}, {transform_indices = @transform_21, window_bounds = array<i64: 1, 1, 32>}, {transform_indices = @transform_22, window_bounds = array<i64: 1, 32, 32>}, {transform_indices = @transform_23, window_bounds = array<i64: 1, 1, 32>}, {transform_indices = @transform_24, window_bounds = array<i64: 1, 1, 32>}, {transform_indices = @transform_25, window_bounds = array<i64: 1, 1, 32>}, {transform_indices = @transform_26, window_bounds = array<i64: 1, 32, 128>}, {transform_indices = @transform_27, window_bounds = array<i64: 1, 1, 128>}, {transform_indices = @transform_28, window_bounds = array<i64: 1, 128, 32>}, {transform_indices = @transform_29, window_bounds = array<i64: 1, 1, 32>}, {transform_indices = @transform_30, window_bounds = array<i64: 1, 1, 32>}, {transform_indices = @transform_31, window_bounds = array<i64: 1, 1, 32>}, {pipeline_mode = #tpu.pipeline_mode<synchronous>, transform_indices = @transform_32, window_bounds = array<i64: 32, 32>}, {pipeline_mode = #tpu.pipeline_mode<synchronous>, transform_indices = @transform_33, window_bounds = array<i64: 1, 32>}, {pipeline_mode = #tpu.pipeline_mode<synchronous>, transform_indices = @transform_34, window_bounds = array<i64: 1, 32>}, {pipeline_mode = #tpu.pipeline_mode<synchronous>, transform_indices = @transform_35, window_bounds = array<i64: 1, 32>}, {pipeline_mode = #tpu.pipeline_mode<synchronous>, transform_indices = @transform_36, window_bounds = array<i64: 32, 3>}, {pipeline_mode = #tpu.pipeline_mode<synchronous>, transform_indices = @transform_37, window_bounds = array<i64: 1, 3>}, {pipeline_mode = #tpu.pipeline_mode<synchronous>, transform_indices = @transform_38, window_bounds = array<i64: 2, 3>}]} {
    %c0 = arith.constant 0 : index
    %c0_0 = arith.constant 0 : index
    %0 = vector.load %arg5[%c0, %c0_0] : memref<16x1xf32, #tpu.memory_space<vmem>>, vector<16x1xf32>
    %c0_i32 = arith.constant 0 : i32
    %1 = arith.cmpi eq, %arg0, %c0_i32 : i32
    %2 = arith.extui %1 : i1 to i32
    %c0_i32_1 = arith.constant 0 : i32
    %3 = arith.cmpi ne, %2, %c0_i32_1 : i32
    scf.if %3 {
      %c0_97 = arith.constant 0 : index
      %c0_98 = arith.constant 0 : index
      %176 = vector.load %arg1[%c0_97, %c0_98] : memref<16x24xf32, #tpu.memory_space<vmem>>, vector<16x24xf32>
      %177 = arith.truncf %176 : vector<16x24xf32> to vector<16x24xbf16>
      %c0_99 = arith.constant 0 : index
      %c0_100 = arith.constant 0 : index
      %178 = vector.load %arg7[%c0_99, %c0_100] : memref<24x16xbf16, #tpu.memory_space<vmem>>, vector<24x16xbf16>
      %cst_101 = arith.constant dense<0.000000e+00> : vector<16x16xf32>
      %179 = tpu.matmul %177, %178, %cst_101 {dimension_numbers = #tpu.dot_dimension_numbers<[1], [0], [0], [1], [0, 0, 1, 1], [], []>} : vector<16x24xbf16>, vector<24x16xbf16>, vector<16x16xf32> -> vector<16x16xf32>
      %c0_102 = arith.constant 0 : index
      %c0_103 = arith.constant 0 : index
      %180 = vector.load %arg8[%c0_102, %c0_103] : memref<1x16xf32, #tpu.memory_space<vmem>>, vector<1x16xf32>
      %181 = vector.broadcast %180 : vector<1x16xf32> to vector<16x16xf32>
      %182 = arith.addf %179, %181 : vector<16x16xf32>
      %c0_104 = arith.constant 0 : index
      %c0_105 = arith.constant 0 : index
      %183 = vector.load %arg9[%c0_104, %c0_105] : memref<1x16xf32, #tpu.memory_space<vmem>>, vector<1x16xf32>
      %c0_106 = arith.constant 0 : index
      %c0_107 = arith.constant 0 : index
      %184 = vector.load %arg10[%c0_106, %c0_107] : memref<1x16xf32, #tpu.memory_space<vmem>>, vector<1x16xf32>
      %cst_108 = arith.constant dense<0.000000e+00> : vector<16xf32>
      %185 = vector.multi_reduction <add>, %182, %cst_108 [1] : vector<16x16xf32> to vector<16xf32>
      %186 = vector.shape_cast %185 : vector<16xf32> to vector<16x1xf32>
      %cst_109 = arith.constant 1.600000e+01 : f32
      %187 = vector.broadcast %cst_109 : f32 to vector<16x1xf32>
      %188 = arith.divf %186, %187 : vector<16x1xf32>
      %189 = vector.broadcast %188 : vector<16x1xf32> to vector<16x16xf32>
      %190 = arith.subf %182, %189 : vector<16x16xf32>
      %191 = arith.mulf %190, %190 : vector<16x16xf32>
      %cst_110 = arith.constant dense<0.000000e+00> : vector<16xf32>
      %192 = vector.multi_reduction <add>, %191, %cst_110 [1] : vector<16x16xf32> to vector<16xf32>
      %193 = vector.shape_cast %192 : vector<16xf32> to vector<16x1xf32>
      %cst_111 = arith.constant 1.600000e+01 : f32
      %194 = vector.broadcast %cst_111 : f32 to vector<16x1xf32>
      %195 = arith.divf %193, %194 : vector<16x1xf32>
      %196 = vector.broadcast %188 : vector<16x1xf32> to vector<16x16xf32>
      %197 = arith.subf %182, %196 : vector<16x16xf32>
      %cst_112 = arith.constant 9.99999996E-13 : f32
      %198 = vector.broadcast %cst_112 : f32 to vector<16x1xf32>
      %199 = arith.addf %195, %198 : vector<16x1xf32>
      %200 = math.rsqrt %199 : vector<16x1xf32>
      %201 = vector.broadcast %200 : vector<16x1xf32> to vector<16x16xf32>
      %202 = arith.mulf %197, %201 : vector<16x16xf32>
      %203 = vector.broadcast %183 : vector<1x16xf32> to vector<16x16xf32>
      %204 = arith.mulf %202, %203 : vector<16x16xf32>
      %205 = vector.broadcast %184 : vector<1x16xf32> to vector<16x16xf32>
      %206 = arith.addf %204, %205 : vector<16x16xf32>
      %c0_113 = arith.constant 0 : index
      %c0_114 = arith.constant 0 : index
      %207 = vector.load %arg2[%c0_113, %c0_114] : memref<16x4xf32, #tpu.memory_space<vmem>>, vector<16x4xf32>
      %208 = arith.truncf %207 : vector<16x4xf32> to vector<16x4xbf16>
      %c0_115 = arith.constant 0 : index
      %c0_116 = arith.constant 0 : index
      %209 = vector.load %arg11[%c0_115, %c0_116] : memref<4x16xbf16, #tpu.memory_space<vmem>>, vector<4x16xbf16>
      %cst_117 = arith.constant dense<0.000000e+00> : vector<16x16xf32>
      %210 = tpu.matmul %208, %209, %cst_117 {dimension_numbers = #tpu.dot_dimension_numbers<[1], [0], [0], [1], [0, 0, 1, 1], [], []>} : vector<16x4xbf16>, vector<4x16xbf16>, vector<16x16xf32> -> vector<16x16xf32>
      %c0_118 = arith.constant 0 : index
      %c0_119 = arith.constant 0 : index
      %211 = vector.load %arg12[%c0_118, %c0_119] : memref<1x16xf32, #tpu.memory_space<vmem>>, vector<1x16xf32>
      %212 = vector.broadcast %211 : vector<1x16xf32> to vector<16x16xf32>
      %213 = arith.addf %210, %212 : vector<16x16xf32>
      %c0_120 = arith.constant 0 : index
      %c0_121 = arith.constant 0 : index
      %214 = vector.load %arg13[%c0_120, %c0_121] : memref<1x16xf32, #tpu.memory_space<vmem>>, vector<1x16xf32>
      %c0_122 = arith.constant 0 : index
      %c0_123 = arith.constant 0 : index
      %215 = vector.load %arg14[%c0_122, %c0_123] : memref<1x16xf32, #tpu.memory_space<vmem>>, vector<1x16xf32>
      %cst_124 = arith.constant dense<0.000000e+00> : vector<16xf32>
      %216 = vector.multi_reduction <add>, %213, %cst_124 [1] : vector<16x16xf32> to vector<16xf32>
      %217 = vector.shape_cast %216 : vector<16xf32> to vector<16x1xf32>
      %cst_125 = arith.constant 1.600000e+01 : f32
      %218 = vector.broadcast %cst_125 : f32 to vector<16x1xf32>
      %219 = arith.divf %217, %218 : vector<16x1xf32>
      %220 = vector.broadcast %219 : vector<16x1xf32> to vector<16x16xf32>
      %221 = arith.subf %213, %220 : vector<16x16xf32>
      %222 = arith.mulf %221, %221 : vector<16x16xf32>
      %cst_126 = arith.constant dense<0.000000e+00> : vector<16xf32>
      %223 = vector.multi_reduction <add>, %222, %cst_126 [1] : vector<16x16xf32> to vector<16xf32>
      %224 = vector.shape_cast %223 : vector<16xf32> to vector<16x1xf32>
      %cst_127 = arith.constant 1.600000e+01 : f32
      %225 = vector.broadcast %cst_127 : f32 to vector<16x1xf32>
      %226 = arith.divf %224, %225 : vector<16x1xf32>
      %227 = vector.broadcast %219 : vector<16x1xf32> to vector<16x16xf32>
      %228 = arith.subf %213, %227 : vector<16x16xf32>
      %cst_128 = arith.constant 9.99999996E-13 : f32
      %229 = vector.broadcast %cst_128 : f32 to vector<16x1xf32>
      %230 = arith.addf %226, %229 : vector<16x1xf32>
      %231 = math.rsqrt %230 : vector<16x1xf32>
      %232 = vector.broadcast %231 : vector<16x1xf32> to vector<16x16xf32>
      %233 = arith.mulf %228, %232 : vector<16x16xf32>
      %234 = vector.broadcast %214 : vector<1x16xf32> to vector<16x16xf32>
      %235 = arith.mulf %233, %234 : vector<16x16xf32>
      %236 = vector.broadcast %215 : vector<1x16xf32> to vector<16x16xf32>
      %237 = arith.addf %235, %236 : vector<16x16xf32>
      %c0_129 = arith.constant 0 : index
      %c0_130 = arith.constant 0 : index
      %238 = vector.load %arg40[%c0_129, %c0_130] : memref<16x32xf32, #tpu.memory_space<vmem>>, vector<16x16xf32>
      tpu.vector_store %arg40[%c0_129, %c0_130], %206 {strides = array<i32>} : memref<16x32xf32, #tpu.memory_space<vmem>>, vector<16x16xf32>,
      %c0_131 = arith.constant 0 : index
      %c16_132 = arith.constant 16 : index
      %239 = vector.load %arg40[%c0_131, %c16_132] : memref<16x32xf32, #tpu.memory_space<vmem>>, vector<16x16xf32>
      tpu.vector_store %arg40[%c0_131, %c16_132], %237 {strides = array<i32>} : memref<16x32xf32, #tpu.memory_space<vmem>>, vector<16x16xf32>,
      %c0_133 = arith.constant 0 : index
      %c0_134 = arith.constant 0 : index
      %240 = vector.load %arg40[%c0_133, %c0_134] : memref<16x32xf32, #tpu.memory_space<vmem>>, vector<16x32xf32>
      %241 = vector.shape_cast %240 : vector<16x32xf32> to vector<2x8x32xf32>
      %c0_135 = arith.constant 0 : index
      %c0_136 = arith.constant 0 : index
      %242 = vector.load %arg3[%c0_135, %c0_136] : memref<8x32xf32, #tpu.memory_space<vmem>>, vector<8x32xf32>
      %243 = vector.shape_cast %242 : vector<8x32xf32> to vector<1x8x32xf32>
      %244 = vector.broadcast %243 : vector<1x8x32xf32> to vector<2x8x32xf32>
      %245 = arith.addf %241, %244 : vector<2x8x32xf32>
      %c0_137 = arith.constant 0 : index
      %c0_138 = arith.constant 0 : index
      %246 = vector.load %arg15[%c0_137, %c0_138] : memref<1x32xf32, #tpu.memory_space<vmem>>, vector<1x32xf32>
      %c0_139 = arith.constant 0 : index
      %c0_140 = arith.constant 0 : index
      %247 = vector.load %arg16[%c0_139, %c0_140] : memref<1x32xf32, #tpu.memory_space<vmem>>, vector<1x32xf32>
      %cst_141 = arith.constant dense<0.000000e+00> : vector<2x8xf32>
      %248 = vector.multi_reduction <add>, %245, %cst_141 [2] : vector<2x8x32xf32> to vector<2x8xf32>
      %249 = vector.shape_cast %248 : vector<2x8xf32> to vector<2x8x1xf32>
      %cst_142 = arith.constant 3.200000e+01 : f32
      %250 = vector.broadcast %cst_142 : f32 to vector<2x8x1xf32>
      %251 = arith.divf %249, %250 : vector<2x8x1xf32>
      %252 = vector.broadcast %251 : vector<2x8x1xf32> to vector<2x8x32xf32>
      %253 = arith.subf %245, %252 : vector<2x8x32xf32>
      %254 = arith.mulf %253, %253 : vector<2x8x32xf32>
      %cst_143 = arith.constant dense<0.000000e+00> : vector<2x8xf32>
      %255 = vector.multi_reduction <add>, %254, %cst_143 [2] : vector<2x8x32xf32> to vector<2x8xf32>
      %256 = vector.shape_cast %255 : vector<2x8xf32> to vector<2x8x1xf32>
      %cst_144 = arith.constant 3.200000e+01 : f32
      %257 = vector.broadcast %cst_144 : f32 to vector<2x8x1xf32>
      %258 = arith.divf %256, %257 : vector<2x8x1xf32>
      %259 = vector.broadcast %251 : vector<2x8x1xf32> to vector<2x8x32xf32>
      %260 = arith.subf %245, %259 : vector<2x8x32xf32>
      %cst_145 = arith.constant 9.99999996E-13 : f32
      %261 = vector.broadcast %cst_145 : f32 to vector<2x8x1xf32>
      %262 = arith.addf %258, %261 : vector<2x8x1xf32>
      %263 = math.rsqrt %262 : vector<2x8x1xf32>
      %264 = vector.broadcast %263 : vector<2x8x1xf32> to vector<2x8x32xf32>
      %265 = arith.mulf %260, %264 : vector<2x8x32xf32>
      %266 = vector.shape_cast %246 : vector<1x32xf32> to vector<1x1x32xf32>
      %267 = vector.broadcast %266 : vector<1x1x32xf32> to vector<2x8x32xf32>
      %268 = arith.mulf %265, %267 : vector<2x8x32xf32>
      %269 = vector.shape_cast %247 : vector<1x32xf32> to vector<1x1x32xf32>
      %270 = vector.broadcast %269 : vector<1x1x32xf32> to vector<2x8x32xf32>
      %271 = arith.addf %268, %270 : vector<2x8x32xf32>
      %272 = vector.shape_cast %271 : vector<2x8x32xf32> to vector<16x32xf32>
      %273 = vector.broadcast %0 : vector<16x1xf32> to vector<16x32xf32>
      %274 = arith.mulf %272, %273 : vector<16x32xf32>
      %c0_146 = arith.constant 0 : index
      %c0_147 = arith.constant 0 : index
      %275 = vector.load %arg40[%c0_146, %c0_147] : memref<16x32xf32, #tpu.memory_space<vmem>>, vector<16x32xf32>
      tpu.vector_store %arg40[%c0_146, %c0_147], %274 {strides = array<i32>} : memref<16x32xf32, #tpu.memory_space<vmem>>, vector<16x32xf32>,
    } else {
    }
    %c0_2 = arith.constant 0 : index
    %c0_3 = arith.constant 0 : index
    %4 = vector.load %arg40[%c0_2, %c0_3] : memref<16x32xf32, #tpu.memory_space<vmem>>, vector<16x32xf32>
    %5 = arith.truncf %4 : vector<16x32xf32> to vector<16x32xbf16>
    %c0_4 = arith.constant 0 : index
    %c0_5 = arith.constant 0 : index
    %c0_6 = arith.constant 0 : index
    %6 = vector.load %arg17[%c0_4, %c0_5, %c0_6] : memref<1x32x32xbf16, #tpu.memory_space<vmem>>, vector<1x32x32xbf16>
    %7 = vector.shape_cast %6 : vector<1x32x32xbf16> to vector<32x32xbf16>
    %cst = arith.constant dense<0.000000e+00> : vector<16x32xf32>
    %8 = tpu.matmul %5, %7, %cst {dimension_numbers = #tpu.dot_dimension_numbers<[1], [0], [0], [1], [0, 0, 1, 1], [], []>} : vector<16x32xbf16>, vector<32x32xbf16>, vector<16x32xf32> -> vector<16x32xf32>
    %c0_7 = arith.constant 0 : index
    %c0_8 = arith.constant 0 : index
    %c0_9 = arith.constant 0 : index
    %9 = vector.load %arg18[%c0_7, %c0_8, %c0_9] : memref<1x1x32xf32, #tpu.memory_space<vmem>>, vector<1x1x32xf32>
    %10 = vector.shape_cast %9 : vector<1x1x32xf32> to vector<1x32xf32>
    %11 = vector.broadcast %10 : vector<1x32xf32> to vector<16x32xf32>
    %12 = arith.addf %8, %11 : vector<16x32xf32>
    %c0_10 = arith.constant 0 : index
    %c0_11 = arith.constant 0 : index
    %c0_12 = arith.constant 0 : index
    %13 = vector.load %arg19[%c0_10, %c0_11, %c0_12] : memref<1x32x32xbf16, #tpu.memory_space<vmem>>, vector<1x32x32xbf16>
    %14 = vector.shape_cast %13 : vector<1x32x32xbf16> to vector<32x32xbf16>
    %cst_13 = arith.constant dense<0.000000e+00> : vector<16x32xf32>
    %15 = tpu.matmul %5, %14, %cst_13 {dimension_numbers = #tpu.dot_dimension_numbers<[1], [0], [0], [1], [0, 0, 1, 1], [], []>} : vector<16x32xbf16>, vector<32x32xbf16>, vector<16x32xf32> -> vector<16x32xf32>
    %c0_14 = arith.constant 0 : index
    %c0_15 = arith.constant 0 : index
    %c0_16 = arith.constant 0 : index
    %16 = vector.load %arg20[%c0_14, %c0_15, %c0_16] : memref<1x1x32xf32, #tpu.memory_space<vmem>>, vector<1x1x32xf32>
    %17 = vector.shape_cast %16 : vector<1x1x32xf32> to vector<1x32xf32>
    %18 = vector.broadcast %17 : vector<1x32xf32> to vector<16x32xf32>
    %19 = arith.addf %15, %18 : vector<16x32xf32>
    %c0_17 = arith.constant 0 : index
    %c0_18 = arith.constant 0 : index
    %c0_19 = arith.constant 0 : index
    %20 = vector.load %arg21[%c0_17, %c0_18, %c0_19] : memref<1x32x32xbf16, #tpu.memory_space<vmem>>, vector<1x32x32xbf16>
    %21 = vector.shape_cast %20 : vector<1x32x32xbf16> to vector<32x32xbf16>
    %cst_20 = arith.constant dense<0.000000e+00> : vector<16x32xf32>
    %22 = tpu.matmul %5, %21, %cst_20 {dimension_numbers = #tpu.dot_dimension_numbers<[1], [0], [0], [1], [0, 0, 1, 1], [], []>} : vector<16x32xbf16>, vector<32x32xbf16>, vector<16x32xf32> -> vector<16x32xf32>
    %c0_21 = arith.constant 0 : index
    %c0_22 = arith.constant 0 : index
    %c0_23 = arith.constant 0 : index
    %23 = vector.load %arg22[%c0_21, %c0_22, %c0_23] : memref<1x1x32xf32, #tpu.memory_space<vmem>>, vector<1x1x32xf32>
    %24 = vector.shape_cast %23 : vector<1x1x32xf32> to vector<1x32xf32>
    %25 = vector.broadcast %24 : vector<1x32xf32> to vector<16x32xf32>
    %26 = arith.addf %22, %25 : vector<16x32xf32>
    %27 = vector.shape_cast %12 : vector<16x32xf32> to vector<2x8x32xf32>
    %28 = arith.truncf %27 : vector<2x8x32xf32> to vector<2x8x32xbf16>
    %29 = vector.shape_cast %19 : vector<16x32xf32> to vector<2x8x32xf32>
    %30 = arith.truncf %29 : vector<2x8x32xf32> to vector<2x8x32xbf16>
    %31 = vector.shape_cast %26 : vector<16x32xf32> to vector<2x8x32xf32>
    %32 = arith.truncf %31 : vector<2x8x32xf32> to vector<2x8x32xbf16>
    %c0_24 = arith.constant 0 : index
    %c0_25 = arith.constant 0 : index
    %c0_26 = arith.constant 0 : index
    %33 = vector.load %arg4[%c0_24, %c0_25, %c0_26] : memref<2x1x8xf32, #tpu.memory_space<vmem>>, vector<2x1x8xf32>
    %cst_27 = arith.constant 0.000000e+00 : f32
    %34 = vector.broadcast %cst_27 : f32 to vector<2x1x8xf32>
    %35 = arith.cmpf oeq, %33, %34 : vector<2x1x8xf32>
    %36 = vector.extract_strided_slice %28 {offsets = [0, 0, 0], sizes = [2, 8, 16], strides = [1, 1, 1]} : vector<2x8x32xbf16> to vector<2x8x16xbf16>
    %37 = vector.extract_strided_slice %30 {offsets = [0, 0, 0], sizes = [2, 8, 16], strides = [1, 1, 1]} : vector<2x8x32xbf16> to vector<2x8x16xbf16>
    "tpu.trace_start"() <{level = 10 : i32, message = "bqd,bkd->bqk"}> : () -> ()
    %cst_28 = arith.constant dense<0.000000e+00> : vector<2x8x8xf32>
    %38 = tpu.matmul %36, %37, %cst_28 {dimension_numbers = #tpu.dot_dimension_numbers<[2], [2], [1], [1], [0, 0, 0, 1, 1, 1], [0], [0]>} : vector<2x8x16xbf16>, vector<2x8x16xbf16>, vector<2x8x8xf32> -> vector<2x8x8xf32>
    "tpu.trace_stop"() : () -> ()
    %cst_29 = arith.constant 2.500000e-01 : f32
    %39 = vector.broadcast %cst_29 : f32 to vector<2x8x8xf32>
    %40 = arith.mulf %38, %39 : vector<2x8x8xf32>
    %cst_30 = arith.constant -3.40282347E+38 : f32
    %41 = vector.shape_cast %35 : vector<2x1x8xi1> to vector<2x1x8xi1>
    %42 = vector.broadcast %41 : vector<2x1x8xi1> to vector<2x8x8xi1>
    %43 = vector.broadcast %cst_30 : f32 to vector<2x8x8xf32>
    %44 = arith.select %42, %43, %40 : vector<2x8x8xi1>, vector<2x8x8xf32>
    %cst_31 = arith.constant dense<0xFF800000> : vector<2x8xf32>
    %45 = vector.multi_reduction <maximumf>, %44, %cst_31 [2] : vector<2x8x8xf32> to vector<2x8xf32>
    %46 = vector.shape_cast %45 : vector<2x8xf32> to vector<2x8x1xf32>
    %47 = vector.broadcast %46 : vector<2x8x1xf32> to vector<2x8x8xf32>
    %48 = arith.subf %44, %47 : vector<2x8x8xf32>
    %49 = math.exp %48 : vector<2x8x8xf32>
    %cst_32 = arith.constant dense<0.000000e+00> : vector<2x8xf32>
    %50 = vector.multi_reduction <add>, %49, %cst_32 [2] : vector<2x8x8xf32> to vector<2x8xf32>
    %51 = vector.shape_cast %50 : vector<2x8xf32> to vector<2x8x1xf32>
    %52 = tpu.reciprocal %51 {approx = true} : vector<2x8x1xf32> -> vector<2x8x1xf32>
    %53 = vector.broadcast %52 : vector<2x8x1xf32> to vector<2x8x8xf32>
    %54 = arith.mulf %49, %53 : vector<2x8x8xf32>
    %55 = arith.truncf %54 : vector<2x8x8xf32> to vector<2x8x8xbf16>
    %56 = vector.extract_strided_slice %32 {offsets = [0, 0, 0], sizes = [2, 8, 16], strides = [1, 1, 1]} : vector<2x8x32xbf16> to vector<2x8x16xbf16>
    "tpu.trace_start"() <{level = 10 : i32, message = "bqk,bkd->bqd"}> : () -> ()
    %cst_33 = arith.constant dense<0.000000e+00> : vector<2x8x16xf32>
    %57 = tpu.matmul %55, %56, %cst_33 {dimension_numbers = #tpu.dot_dimension_numbers<[2], [1], [1], [2], [0, 0, 0, 1, 1, 2], [0], [0]>} : vector<2x8x8xbf16>, vector<2x8x16xbf16>, vector<2x8x16xf32> -> vector<2x8x16xf32>
    "tpu.trace_stop"() : () -> ()
    %c0_34 = arith.constant 0 : index
    %c0_35 = arith.constant 0 : index
    %c0_36 = arith.constant 0 : index
    %58 = vector.load %arg41[%c0_34, %c0_35, %c0_36] : memref<2x8x32xf32, #tpu.memory_space<vmem>>, vector<2x8x16xf32>
    tpu.vector_store %arg41[%c0_34, %c0_35, %c0_36], %57 {strides = array<i32>} : memref<2x8x32xf32, #tpu.memory_space<vmem>>, vector<2x8x16xf32>,
    %59 = vector.extract_strided_slice %28 {offsets = [0, 0, 16], sizes = [2, 8, 16], strides = [1, 1, 1]} : vector<2x8x32xbf16> to vector<2x8x16xbf16>
    %60 = vector.extract_strided_slice %30 {offsets = [0, 0, 16], sizes = [2, 8, 16], strides = [1, 1, 1]} : vector<2x8x32xbf16> to vector<2x8x16xbf16>
    "tpu.trace_start"() <{level = 10 : i32, message = "bqd,bkd->bqk"}> : () -> ()
    %cst_37 = arith.constant dense<0.000000e+00> : vector<2x8x8xf32>
    %61 = tpu.matmul %59, %60, %cst_37 {dimension_numbers = #tpu.dot_dimension_numbers<[2], [2], [1], [1], [0, 0, 0, 1, 1, 1], [0], [0]>} : vector<2x8x16xbf16>, vector<2x8x16xbf16>, vector<2x8x8xf32> -> vector<2x8x8xf32>
    "tpu.trace_stop"() : () -> ()
    %cst_38 = arith.constant 2.500000e-01 : f32
    %62 = vector.broadcast %cst_38 : f32 to vector<2x8x8xf32>
    %63 = arith.mulf %61, %62 : vector<2x8x8xf32>
    %cst_39 = arith.constant -3.40282347E+38 : f32
    %64 = vector.shape_cast %35 : vector<2x1x8xi1> to vector<2x1x8xi1>
    %65 = vector.broadcast %64 : vector<2x1x8xi1> to vector<2x8x8xi1>
    %66 = vector.broadcast %cst_39 : f32 to vector<2x8x8xf32>
    %67 = arith.select %65, %66, %63 : vector<2x8x8xi1>, vector<2x8x8xf32>
    %cst_40 = arith.constant dense<0xFF800000> : vector<2x8xf32>
    %68 = vector.multi_reduction <maximumf>, %67, %cst_40 [2] : vector<2x8x8xf32> to vector<2x8xf32>
    %69 = vector.shape_cast %68 : vector<2x8xf32> to vector<2x8x1xf32>
    %70 = vector.broadcast %69 : vector<2x8x1xf32> to vector<2x8x8xf32>
    %71 = arith.subf %67, %70 : vector<2x8x8xf32>
    %72 = math.exp %71 : vector<2x8x8xf32>
    %cst_41 = arith.constant dense<0.000000e+00> : vector<2x8xf32>
    %73 = vector.multi_reduction <add>, %72, %cst_41 [2] : vector<2x8x8xf32> to vector<2x8xf32>
    %74 = vector.shape_cast %73 : vector<2x8xf32> to vector<2x8x1xf32>
    %75 = tpu.reciprocal %74 {approx = true} : vector<2x8x1xf32> -> vector<2x8x1xf32>
    %76 = vector.broadcast %75 : vector<2x8x1xf32> to vector<2x8x8xf32>
    %77 = arith.mulf %72, %76 : vector<2x8x8xf32>
    %78 = arith.truncf %77 : vector<2x8x8xf32> to vector<2x8x8xbf16>
    %79 = vector.extract_strided_slice %32 {offsets = [0, 0, 16], sizes = [2, 8, 16], strides = [1, 1, 1]} : vector<2x8x32xbf16> to vector<2x8x16xbf16>
    "tpu.trace_start"() <{level = 10 : i32, message = "bqk,bkd->bqd"}> : () -> ()
    %cst_42 = arith.constant dense<0.000000e+00> : vector<2x8x16xf32>
    %80 = tpu.matmul %78, %79, %cst_42 {dimension_numbers = #tpu.dot_dimension_numbers<[2], [1], [1], [2], [0, 0, 0, 1, 1, 2], [0], [0]>} : vector<2x8x8xbf16>, vector<2x8x16xbf16>, vector<2x8x16xf32> -> vector<2x8x16xf32>
    "tpu.trace_stop"() : () -> ()
    %c0_43 = arith.constant 0 : index
    %c0_44 = arith.constant 0 : index
    %c16 = arith.constant 16 : index
    %81 = vector.load %arg41[%c0_43, %c0_44, %c16] : memref<2x8x32xf32, #tpu.memory_space<vmem>>, vector<2x8x16xf32>
    tpu.vector_store %arg41[%c0_43, %c0_44, %c16], %80 {strides = array<i32>} : memref<2x8x32xf32, #tpu.memory_space<vmem>>, vector<2x8x16xf32>,
    %c0_45 = arith.constant 0 : index
    %c0_46 = arith.constant 0 : index
    %c0_47 = arith.constant 0 : index
    %82 = vector.load %arg41[%c0_45, %c0_46, %c0_47] : memref<2x8x32xf32, #tpu.memory_space<vmem>>, vector<2x8x32xf32>
    %83 = vector.shape_cast %82 : vector<2x8x32xf32> to vector<16x32xf32>
    %84 = arith.truncf %83 : vector<16x32xf32> to vector<16x32xbf16>
    %c0_48 = arith.constant 0 : index
    %c0_49 = arith.constant 0 : index
    %c0_50 = arith.constant 0 : index
    %85 = vector.load %arg23[%c0_48, %c0_49, %c0_50] : memref<1x32x32xbf16, #tpu.memory_space<vmem>>, vector<1x32x32xbf16>
    %86 = vector.shape_cast %85 : vector<1x32x32xbf16> to vector<32x32xbf16>
    %cst_51 = arith.constant dense<0.000000e+00> : vector<16x32xf32>
    %87 = tpu.matmul %84, %86, %cst_51 {dimension_numbers = #tpu.dot_dimension_numbers<[1], [0], [0], [1], [0, 0, 1, 1], [], []>} : vector<16x32xbf16>, vector<32x32xbf16>, vector<16x32xf32> -> vector<16x32xf32>
    %c0_52 = arith.constant 0 : index
    %c0_53 = arith.constant 0 : index
    %c0_54 = arith.constant 0 : index
    %88 = vector.load %arg24[%c0_52, %c0_53, %c0_54] : memref<1x1x32xf32, #tpu.memory_space<vmem>>, vector<1x1x32xf32>
    %89 = vector.shape_cast %88 : vector<1x1x32xf32> to vector<1x32xf32>
    %90 = vector.broadcast %89 : vector<1x32xf32> to vector<16x32xf32>
    %91 = arith.addf %87, %90 : vector<16x32xf32>
    %92 = arith.addf %4, %91 : vector<16x32xf32>
    %c0_55 = arith.constant 0 : index
    %c0_56 = arith.constant 0 : index
    %c0_57 = arith.constant 0 : index
    %93 = vector.load %arg25[%c0_55, %c0_56, %c0_57] : memref<1x1x32xf32, #tpu.memory_space<vmem>>, vector<1x1x32xf32>
    %94 = vector.shape_cast %93 : vector<1x1x32xf32> to vector<1x32xf32>
    %c0_58 = arith.constant 0 : index
    %c0_59 = arith.constant 0 : index
    %c0_60 = arith.constant 0 : index
    %95 = vector.load %arg26[%c0_58, %c0_59, %c0_60] : memref<1x1x32xf32, #tpu.memory_space<vmem>>, vector<1x1x32xf32>
    %96 = vector.shape_cast %95 : vector<1x1x32xf32> to vector<1x32xf32>
    %cst_61 = arith.constant dense<0.000000e+00> : vector<16xf32>
    %97 = vector.multi_reduction <add>, %92, %cst_61 [1] : vector<16x32xf32> to vector<16xf32>
    %98 = vector.shape_cast %97 : vector<16xf32> to vector<16x1xf32>
    %cst_62 = arith.constant 3.200000e+01 : f32
    %99 = vector.broadcast %cst_62 : f32 to vector<16x1xf32>
    %100 = arith.divf %98, %99 : vector<16x1xf32>
    %101 = vector.broadcast %100 : vector<16x1xf32> to vector<16x32xf32>
    %102 = arith.subf %92, %101 : vector<16x32xf32>
    %103 = arith.mulf %102, %102 : vector<16x32xf32>
    %cst_63 = arith.constant dense<0.000000e+00> : vector<16xf32>
    %104 = vector.multi_reduction <add>, %103, %cst_63 [1] : vector<16x32xf32> to vector<16xf32>
    %105 = vector.shape_cast %104 : vector<16xf32> to vector<16x1xf32>
    %cst_64 = arith.constant 3.200000e+01 : f32
    %106 = vector.broadcast %cst_64 : f32 to vector<16x1xf32>
    %107 = arith.divf %105, %106 : vector<16x1xf32>
    %108 = vector.broadcast %100 : vector<16x1xf32> to vector<16x32xf32>
    %109 = arith.subf %92, %108 : vector<16x32xf32>
    %cst_65 = arith.constant 9.99999996E-13 : f32
    %110 = vector.broadcast %cst_65 : f32 to vector<16x1xf32>
    %111 = arith.addf %107, %110 : vector<16x1xf32>
    %112 = math.rsqrt %111 : vector<16x1xf32>
    %113 = vector.broadcast %112 : vector<16x1xf32> to vector<16x32xf32>
    %114 = arith.mulf %109, %113 : vector<16x32xf32>
    %115 = vector.broadcast %94 : vector<1x32xf32> to vector<16x32xf32>
    %116 = arith.mulf %114, %115 : vector<16x32xf32>
    %117 = vector.broadcast %96 : vector<1x32xf32> to vector<16x32xf32>
    %118 = arith.addf %116, %117 : vector<16x32xf32>
    %119 = arith.truncf %118 : vector<16x32xf32> to vector<16x32xbf16>
    %c0_66 = arith.constant 0 : index
    %c0_67 = arith.constant 0 : index
    %c0_68 = arith.constant 0 : index
    %120 = vector.load %arg27[%c0_66, %c0_67, %c0_68] : memref<1x32x128xbf16, #tpu.memory_space<vmem>>, vector<1x32x128xbf16>
    %121 = vector.shape_cast %120 : vector<1x32x128xbf16> to vector<32x128xbf16>
    %cst_69 = arith.constant dense<0.000000e+00> : vector<16x128xf32>
    %122 = tpu.matmul %119, %121, %cst_69 {dimension_numbers = #tpu.dot_dimension_numbers<[1], [0], [0], [1], [0, 0, 1, 1], [], []>} : vector<16x32xbf16>, vector<32x128xbf16>, vector<16x128xf32> -> vector<16x128xf32>
    %c0_70 = arith.constant 0 : index
    %c0_71 = arith.constant 0 : index
    %c0_72 = arith.constant 0 : index
    %123 = vector.load %arg28[%c0_70, %c0_71, %c0_72] : memref<1x1x128xf32, #tpu.memory_space<vmem>>, vector<1x1x128xf32>
    %124 = vector.shape_cast %123 : vector<1x1x128xf32> to vector<1x128xf32>
    %125 = vector.broadcast %124 : vector<1x128xf32> to vector<16x128xf32>
    %126 = arith.addf %122, %125 : vector<16x128xf32>
    %cst_73 = arith.constant 5.000000e-01 : f32
    %127 = vector.broadcast %cst_73 : f32 to vector<16x128xf32>
    %128 = arith.mulf %127, %126 : vector<16x128xf32>
    %cst_74 = arith.constant 0.707106769 : f32
    %129 = vector.broadcast %cst_74 : f32 to vector<16x128xf32>
    %130 = arith.mulf %126, %129 : vector<16x128xf32>
    %131 = math.erf %130 : vector<16x128xf32>
    %cst_75 = arith.constant 1.000000e+00 : f32
    %132 = vector.broadcast %cst_75 : f32 to vector<16x128xf32>
    %133 = arith.addf %132, %131 : vector<16x128xf32>
    %134 = arith.mulf %128, %133 : vector<16x128xf32>
    %135 = arith.truncf %134 : vector<16x128xf32> to vector<16x128xbf16>
    %c0_76 = arith.constant 0 : index
    %c0_77 = arith.constant 0 : index
    %c0_78 = arith.constant 0 : index
    %136 = vector.load %arg29[%c0_76, %c0_77, %c0_78] : memref<1x128x32xbf16, #tpu.memory_space<vmem>>, vector<1x128x32xbf16>
    %137 = vector.shape_cast %136 : vector<1x128x32xbf16> to vector<128x32xbf16>
    %cst_79 = arith.constant dense<0.000000e+00> : vector<16x32xf32>
    %138 = tpu.matmul %135, %137, %cst_79 {dimension_numbers = #tpu.dot_dimension_numbers<[1], [0], [0], [1], [0, 0, 1, 1], [], []>} : vector<16x128xbf16>, vector<128x32xbf16>, vector<16x32xf32> -> vector<16x32xf32>
    %c0_80 = arith.constant 0 : index
    %c0_81 = arith.constant 0 : index
    %c0_82 = arith.constant 0 : index
    %139 = vector.load %arg30[%c0_80, %c0_81, %c0_82] : memref<1x1x32xf32, #tpu.memory_space<vmem>>, vector<1x1x32xf32>
    %140 = vector.shape_cast %139 : vector<1x1x32xf32> to vector<1x32xf32>
    %141 = vector.broadcast %140 : vector<1x32xf32> to vector<16x32xf32>
    %142 = arith.addf %138, %141 : vector<16x32xf32>
    %143 = arith.addf %118, %142 : vector<16x32xf32>
    %c0_83 = arith.constant 0 : index
    %c0_84 = arith.constant 0 : index
    %c0_85 = arith.constant 0 : index
    %144 = vector.load %arg31[%c0_83, %c0_84, %c0_85] : memref<1x1x32xf32, #tpu.memory_space<vmem>>, vector<1x1x32xf32>
    %145 = vector.shape_cast %144 : vector<1x1x32xf32> to vector<1x32xf32>
    %c0_86 = arith.constant 0 : index
    %c0_87 = arith.constant 0 : index
    %c0_88 = arith.constant 0 : index
    %146 = vector.load %arg32[%c0_86, %c0_87, %c0_88] : memref<1x1x32xf32, #tpu.memory_space<vmem>>, vector<1x1x32xf32>
    %147 = vector.shape_cast %146 : vector<1x1x32xf32> to vector<1x32xf32>
    %cst_89 = arith.constant dense<0.000000e+00> : vector<16xf32>
    %148 = vector.multi_reduction <add>, %143, %cst_89 [1] : vector<16x32xf32> to vector<16xf32>
    %149 = vector.shape_cast %148 : vector<16xf32> to vector<16x1xf32>
    %cst_90 = arith.constant 3.200000e+01 : f32
    %150 = vector.broadcast %cst_90 : f32 to vector<16x1xf32>
    %151 = arith.divf %149, %150 : vector<16x1xf32>
    %152 = vector.broadcast %151 : vector<16x1xf32> to vector<16x32xf32>
    %153 = arith.subf %143, %152 : vector<16x32xf32>
    %154 = arith.mulf %153, %153 : vector<16x32xf32>
    %cst_91 = arith.constant dense<0.000000e+00> : vector<16xf32>
    %155 = vector.multi_reduction <add>, %154, %cst_91 [1] : vector<16x32xf32> to vector<16xf32>
    %156 = vector.shape_cast %155 : vector<16xf32> to vector<16x1xf32>
    %cst_92 = arith.constant 3.200000e+01 : f32
    %157 = vector.broadcast %cst_92 : f32 to vector<16x1xf32>
    %158 = arith.divf %156, %157 : vector<16x1xf32>
    %159 = vector.broadcast %151 : vector<16x1xf32> to vector<16x32xf32>
    %160 = arith.subf %143, %159 : vector<16x32xf32>
    %cst_93 = arith.constant 9.99999996E-13 : f32
    %161 = vector.broadcast %cst_93 : f32 to vector<16x1xf32>
    %162 = arith.addf %158, %161 : vector<16x1xf32>
    %163 = math.rsqrt %162 : vector<16x1xf32>
    %164 = vector.broadcast %163 : vector<16x1xf32> to vector<16x32xf32>
    %165 = arith.mulf %160, %164 : vector<16x32xf32>
    %166 = vector.broadcast %145 : vector<1x32xf32> to vector<16x32xf32>
    %167 = arith.mulf %165, %166 : vector<16x32xf32>
    %168 = vector.broadcast %147 : vector<1x32xf32> to vector<16x32xf32>
    %169 = arith.addf %167, %168 : vector<16x32xf32>
    %170 = vector.broadcast %0 : vector<16x1xf32> to vector<16x32xf32>
    %171 = arith.mulf %169, %170 : vector<16x32xf32>
    %c0_94 = arith.constant 0 : index
    %c0_95 = arith.constant 0 : index
    %172 = vector.load %arg40[%c0_94, %c0_95] : memref<16x32xf32, #tpu.memory_space<vmem>>, vector<16x32xf32>
    tpu.vector_store %arg40[%c0_94, %c0_95], %171 {strides = array<i32>} : memref<16x32xf32, #tpu.memory_space<vmem>>, vector<16x32xf32>,
    %c1_i32 = arith.constant 1 : i32
    %173 = arith.cmpi eq, %arg0, %c1_i32 : i32
    %174 = arith.extui %173 : i1 to i32
    %c0_i32_96 = arith.constant 0 : i32
    %175 = arith.cmpi ne, %174, %c0_i32_96 : i32
    scf.if %175 {
      %c0_97 = arith.constant 0 : index
      %c0_98 = arith.constant 0 : index
      %176 = vector.load %arg6[%c0_97, %c0_98] : memref<2x16xf32, #tpu.memory_space<vmem>>, vector<2x16xf32>
      %c0_99 = arith.constant 0 : index
      %c0_100 = arith.constant 0 : index
      %177 = vector.load %arg40[%c0_99, %c0_100] : memref<16x32xf32, #tpu.memory_space<vmem>>, vector<16x32xf32>
      %cst_101 = arith.constant dense<0.000000e+00> : vector<2x32xf32>
      %178 = tpu.matmul %176, %177, %cst_101 {dimension_numbers = #tpu.dot_dimension_numbers<[1], [0], [0], [1], [0, 0, 1, 1], [], []>} : vector<2x16xf32>, vector<16x32xf32>, vector<2x32xf32> -> vector<2x32xf32>
      %179 = arith.truncf %178 : vector<2x32xf32> to vector<2x32xbf16>
      %c0_102 = arith.constant 0 : index
      %c0_103 = arith.constant 0 : index
      %180 = vector.load %arg33[%c0_102, %c0_103] : memref<32x32xbf16, #tpu.memory_space<vmem>>, vector<32x32xbf16>
      %cst_104 = arith.constant dense<0.000000e+00> : vector<2x32xf32>
      %181 = tpu.matmul %179, %180, %cst_104 {dimension_numbers = #tpu.dot_dimension_numbers<[1], [0], [0], [1], [0, 0, 1, 1], [], []>} : vector<2x32xbf16>, vector<32x32xbf16>, vector<2x32xf32> -> vector<2x32xf32>
      %c0_105 = arith.constant 0 : index
      %c0_106 = arith.constant 0 : index
      %182 = vector.load %arg34[%c0_105, %c0_106] : memref<1x32xf32, #tpu.memory_space<vmem>>, vector<1x32xf32>
      %183 = vector.broadcast %182 : vector<1x32xf32> to vector<2x32xf32>
      %184 = arith.addf %181, %183 : vector<2x32xf32>
      %c0_107 = arith.constant 0 : index
      %c0_108 = arith.constant 0 : index
      %185 = vector.load %arg35[%c0_107, %c0_108] : memref<1x32xf32, #tpu.memory_space<vmem>>, vector<1x32xf32>
      %c0_109 = arith.constant 0 : index
      %c0_110 = arith.constant 0 : index
      %186 = vector.load %arg36[%c0_109, %c0_110] : memref<1x32xf32, #tpu.memory_space<vmem>>, vector<1x32xf32>
      %cst_111 = arith.constant dense<0.000000e+00> : vector<2xf32>
      %187 = vector.multi_reduction <add>, %184, %cst_111 [1] : vector<2x32xf32> to vector<2xf32>
      %188 = vector.shape_cast %187 : vector<2xf32> to vector<2x1xf32>
      %cst_112 = arith.constant 3.200000e+01 : f32
      %189 = vector.broadcast %cst_112 : f32 to vector<2x1xf32>
      %190 = arith.divf %188, %189 : vector<2x1xf32>
      %191 = vector.broadcast %190 : vector<2x1xf32> to vector<2x32xf32>
      %192 = arith.subf %184, %191 : vector<2x32xf32>
      %193 = arith.mulf %192, %192 : vector<2x32xf32>
      %cst_113 = arith.constant dense<0.000000e+00> : vector<2xf32>
      %194 = vector.multi_reduction <add>, %193, %cst_113 [1] : vector<2x32xf32> to vector<2xf32>
      %195 = vector.shape_cast %194 : vector<2xf32> to vector<2x1xf32>
      %cst_114 = arith.constant 3.200000e+01 : f32
      %196 = vector.broadcast %cst_114 : f32 to vector<2x1xf32>
      %197 = arith.divf %195, %196 : vector<2x1xf32>
      %198 = vector.broadcast %190 : vector<2x1xf32> to vector<2x32xf32>
      %199 = arith.subf %184, %198 : vector<2x32xf32>
      %cst_115 = arith.constant 9.99999996E-13 : f32
      %200 = vector.broadcast %cst_115 : f32 to vector<2x1xf32>
      %201 = arith.addf %197, %200 : vector<2x1xf32>
      %202 = math.rsqrt %201 : vector<2x1xf32>
      %203 = vector.broadcast %202 : vector<2x1xf32> to vector<2x32xf32>
      %204 = arith.mulf %199, %203 : vector<2x32xf32>
      %205 = vector.broadcast %185 : vector<1x32xf32> to vector<2x32xf32>
      %206 = arith.mulf %204, %205 : vector<2x32xf32>
      %207 = vector.broadcast %186 : vector<1x32xf32> to vector<2x32xf32>
      %208 = arith.addf %206, %207 : vector<2x32xf32>
      %cst_116 = arith.constant 0.000000e+00 : f32
      %209 = vector.broadcast %cst_116 : f32 to vector<2x32xf32>
      %210 = arith.maximumf %208, %209 : vector<2x32xf32>
      %211 = arith.truncf %210 : vector<2x32xf32> to vector<2x32xbf16>
      %c0_117 = arith.constant 0 : index
      %c0_118 = arith.constant 0 : index
      %212 = vector.load %arg37[%c0_117, %c0_118] : memref<32x3xbf16, #tpu.memory_space<vmem>>, vector<32x3xbf16>
      %cst_119 = arith.constant dense<0.000000e+00> : vector<2x3xf32>
      %213 = tpu.matmul %211, %212, %cst_119 {dimension_numbers = #tpu.dot_dimension_numbers<[1], [0], [0], [1], [0, 0, 1, 1], [], []>} : vector<2x32xbf16>, vector<32x3xbf16>, vector<2x3xf32> -> vector<2x3xf32>
      %c0_120 = arith.constant 0 : index
      %c0_121 = arith.constant 0 : index
      %214 = vector.load %arg38[%c0_120, %c0_121] : memref<1x3xf32, #tpu.memory_space<vmem>>, vector<1x3xf32>
      %215 = vector.broadcast %214 : vector<1x3xf32> to vector<2x3xf32>
      %216 = arith.addf %213, %215 : vector<2x3xf32>
      %c0_122 = arith.constant 0 : index
      %c0_123 = arith.constant 0 : index
      %217 = vector.load %arg39[%c0_122, %c0_123] : memref<2x3xf32, #tpu.memory_space<vmem>>, vector<2x3xf32>
      tpu.vector_store %arg39[%c0_122, %c0_123], %216 {strides = array<i32>} : memref<2x3xf32, #tpu.memory_space<vmem>>, vector<2x3xf32>,
    } else {
    }
    return
  }
  func.func @transform_0(%arg0: i32) -> (i32, i32) {
    %c0_i32 = arith.constant 0 : i32
    %c0_i32_0 = arith.constant 0 : i32
    %c0_i32_1 = arith.constant 0 : i32
    return %c0_i32, %c0_i32_0 : i32, i32
  }
  func.func @transform_1(%arg0: i32) -> (i32, i32) {
    %c0_i32 = arith.constant 0 : i32
    %c0_i32_0 = arith.constant 0 : i32
    %c0_i32_1 = arith.constant 0 : i32
    return %c0_i32, %c0_i32_0 : i32, i32
  }
  func.func @transform_2(%arg0: i32) -> (i32, i32) {
    %c0_i32 = arith.constant 0 : i32
    %c0_i32_0 = arith.constant 0 : i32
    %c0_i32_1 = arith.constant 0 : i32
    return %c0_i32, %c0_i32_0 : i32, i32
  }
  func.func @transform_3(%arg0: i32) -> (i32, i32, i32) {
    %c0_i32 = arith.constant 0 : i32
    %c0_i32_0 = arith.constant 0 : i32
    %c0_i32_1 = arith.constant 0 : i32
    %c0_i32_2 = arith.constant 0 : i32
    return %c0_i32, %c0_i32_0, %c0_i32_1 : i32, i32, i32
  }
  func.func @transform_4(%arg0: i32) -> (i32, i32) {
    %c0_i32 = arith.constant 0 : i32
    %c0_i32_0 = arith.constant 0 : i32
    %c0_i32_1 = arith.constant 0 : i32
    return %c0_i32, %c0_i32_0 : i32, i32
  }
  func.func @transform_5(%arg0: i32) -> (i32, i32) {
    %c0_i32 = arith.constant 0 : i32
    %c0_i32_0 = arith.constant 0 : i32
    %c0_i32_1 = arith.constant 0 : i32
    return %c0_i32, %c0_i32_0 : i32, i32
  }
  func.func @transform_6(%arg0: i32) -> (i32, i32) {
    %c0_i32 = arith.constant 0 : i32
    %c0_i32_0 = arith.constant 0 : i32
    %c0_i32_1 = arith.constant 0 : i32
    return %c0_i32, %c0_i32_0 : i32, i32
  }
  func.func @transform_7(%arg0: i32) -> (i32, i32) {
    %c0_i32 = arith.constant 0 : i32
    %c0_i32_0 = arith.constant 0 : i32
    %c0_i32_1 = arith.constant 0 : i32
    return %c0_i32, %c0_i32_0 : i32, i32
  }
  func.func @transform_8(%arg0: i32) -> (i32, i32) {
    %c0_i32 = arith.constant 0 : i32
    %c0_i32_0 = arith.constant 0 : i32
    %c0_i32_1 = arith.constant 0 : i32
    return %c0_i32, %c0_i32_0 : i32, i32
  }
  func.func @transform_9(%arg0: i32) -> (i32, i32) {
    %c0_i32 = arith.constant 0 : i32
    %c0_i32_0 = arith.constant 0 : i32
    %c0_i32_1 = arith.constant 0 : i32
    return %c0_i32, %c0_i32_0 : i32, i32
  }
  func.func @transform_10(%arg0: i32) -> (i32, i32) {
    %c0_i32 = arith.constant 0 : i32
    %c0_i32_0 = arith.constant 0 : i32
    %c0_i32_1 = arith.constant 0 : i32
    return %c0_i32, %c0_i32_0 : i32, i32
  }
  func.func @transform_11(%arg0: i32) -> (i32, i32) {
    %c0_i32 = arith.constant 0 : i32
    %c0_i32_0 = arith.constant 0 : i32
    %c0_i32_1 = arith.constant 0 : i32
    return %c0_i32, %c0_i32_0 : i32, i32
  }
  func.func @transform_12(%arg0: i32) -> (i32, i32) {
    %c0_i32 = arith.constant 0 : i32
    %c0_i32_0 = arith.constant 0 : i32
    %c0_i32_1 = arith.constant 0 : i32
    return %c0_i32, %c0_i32_0 : i32, i32
  }
  func.func @transform_13(%arg0: i32) -> (i32, i32) {
    %c0_i32 = arith.constant 0 : i32
    %c0_i32_0 = arith.constant 0 : i32
    %c0_i32_1 = arith.constant 0 : i32
    return %c0_i32, %c0_i32_0 : i32, i32
  }
  func.func @transform_14(%arg0: i32) -> (i32, i32) {
    %c0_i32 = arith.constant 0 : i32
    %c0_i32_0 = arith.constant 0 : i32
    %c0_i32_1 = arith.constant 0 : i32
    return %c0_i32, %c0_i32_0 : i32, i32
  }
  func.func @transform_15(%arg0: i32) -> (i32, i32) {
    %c0_i32 = arith.constant 0 : i32
    %c0_i32_0 = arith.constant 0 : i32
    %c0_i32_1 = arith.constant 0 : i32
    return %c0_i32, %c0_i32_0 : i32, i32
  }
  func.func @transform_16(%arg0: i32) -> (i32, i32, i32) {
    %c0_i32 = arith.constant 0 : i32
    %c0_i32_0 = arith.constant 0 : i32
    %c0_i32_1 = arith.constant 0 : i32
    return %arg0, %c0_i32, %c0_i32_0 : i32, i32, i32
  }
  func.func @transform_17(%arg0: i32) -> (i32, i32, i32) {
    %c0_i32 = arith.constant 0 : i32
    %c0_i32_0 = arith.constant 0 : i32
    %c0_i32_1 = arith.constant 0 : i32
    return %arg0, %c0_i32, %c0_i32_0 : i32, i32, i32
  }
  func.func @transform_18(%arg0: i32) -> (i32, i32, i32) {
    %c0_i32 = arith.constant 0 : i32
    %c0_i32_0 = arith.constant 0 : i32
    %c0_i32_1 = arith.constant 0 : i32
    return %arg0, %c0_i32, %c0_i32_0 : i32, i32, i32
  }
  func.func @transform_19(%arg0: i32) -> (i32, i32, i32) {
    %c0_i32 = arith.constant 0 : i32
    %c0_i32_0 = arith.constant 0 : i32
    %c0_i32_1 = arith.constant 0 : i32
    return %arg0, %c0_i32, %c0_i32_0 : i32, i32, i32
  }
  func.func @transform_20(%arg0: i32) -> (i32, i32, i32) {
    %c0_i32 = arith.constant 0 : i32
    %c0_i32_0 = arith.constant 0 : i32
    %c0_i32_1 = arith.constant 0 : i32
    return %arg0, %c0_i32, %c0_i32_0 : i32, i32, i32
  }
  func.func @transform_21(%arg0: i32) -> (i32, i32, i32) {
    %c0_i32 = arith.constant 0 : i32
    %c0_i32_0 = arith.constant 0 : i32
    %c0_i32_1 = arith.constant 0 : i32
    return %arg0, %c0_i32, %c0_i32_0 : i32, i32, i32
  }
  func.func @transform_22(%arg0: i32) -> (i32, i32, i32) {
    %c0_i32 = arith.constant 0 : i32
    %c0_i32_0 = arith.constant 0 : i32
    %c0_i32_1 = arith.constant 0 : i32
    return %arg0, %c0_i32, %c0_i32_0 : i32, i32, i32
  }
  func.func @transform_23(%arg0: i32) -> (i32, i32, i32) {
    %c0_i32 = arith.constant 0 : i32
    %c0_i32_0 = arith.constant 0 : i32
    %c0_i32_1 = arith.constant 0 : i32
    return %arg0, %c0_i32, %c0_i32_0 : i32, i32, i32
  }
  func.func @transform_24(%arg0: i32) -> (i32, i32, i32) {
    %c0_i32 = arith.constant 0 : i32
    %c0_i32_0 = arith.constant 0 : i32
    %c0_i32_1 = arith.constant 0 : i32
    return %arg0, %c0_i32, %c0_i32_0 : i32, i32, i32
  }
  func.func @transform_25(%arg0: i32) -> (i32, i32, i32) {
    %c0_i32 = arith.constant 0 : i32
    %c0_i32_0 = arith.constant 0 : i32
    %c0_i32_1 = arith.constant 0 : i32
    return %arg0, %c0_i32, %c0_i32_0 : i32, i32, i32
  }
  func.func @transform_26(%arg0: i32) -> (i32, i32, i32) {
    %c0_i32 = arith.constant 0 : i32
    %c0_i32_0 = arith.constant 0 : i32
    %c0_i32_1 = arith.constant 0 : i32
    return %arg0, %c0_i32, %c0_i32_0 : i32, i32, i32
  }
  func.func @transform_27(%arg0: i32) -> (i32, i32, i32) {
    %c0_i32 = arith.constant 0 : i32
    %c0_i32_0 = arith.constant 0 : i32
    %c0_i32_1 = arith.constant 0 : i32
    return %arg0, %c0_i32, %c0_i32_0 : i32, i32, i32
  }
  func.func @transform_28(%arg0: i32) -> (i32, i32, i32) {
    %c0_i32 = arith.constant 0 : i32
    %c0_i32_0 = arith.constant 0 : i32
    %c0_i32_1 = arith.constant 0 : i32
    return %arg0, %c0_i32, %c0_i32_0 : i32, i32, i32
  }
  func.func @transform_29(%arg0: i32) -> (i32, i32, i32) {
    %c0_i32 = arith.constant 0 : i32
    %c0_i32_0 = arith.constant 0 : i32
    %c0_i32_1 = arith.constant 0 : i32
    return %arg0, %c0_i32, %c0_i32_0 : i32, i32, i32
  }
  func.func @transform_30(%arg0: i32) -> (i32, i32, i32) {
    %c0_i32 = arith.constant 0 : i32
    %c0_i32_0 = arith.constant 0 : i32
    %c0_i32_1 = arith.constant 0 : i32
    return %arg0, %c0_i32, %c0_i32_0 : i32, i32, i32
  }
  func.func @transform_31(%arg0: i32) -> (i32, i32, i32) {
    %c0_i32 = arith.constant 0 : i32
    %c0_i32_0 = arith.constant 0 : i32
    %c0_i32_1 = arith.constant 0 : i32
    return %arg0, %c0_i32, %c0_i32_0 : i32, i32, i32
  }
  func.func @transform_32(%arg0: i32) -> (i32, i32) {
    %c0_i32 = arith.constant 0 : i32
    %c0_i32_0 = arith.constant 0 : i32
    %c0_i32_1 = arith.constant 0 : i32
    return %c0_i32, %c0_i32_0 : i32, i32
  }
  func.func @transform_33(%arg0: i32) -> (i32, i32) {
    %c0_i32 = arith.constant 0 : i32
    %c0_i32_0 = arith.constant 0 : i32
    %c0_i32_1 = arith.constant 0 : i32
    return %c0_i32, %c0_i32_0 : i32, i32
  }
  func.func @transform_34(%arg0: i32) -> (i32, i32) {
    %c0_i32 = arith.constant 0 : i32
    %c0_i32_0 = arith.constant 0 : i32
    %c0_i32_1 = arith.constant 0 : i32
    return %c0_i32, %c0_i32_0 : i32, i32
  }
  func.func @transform_35(%arg0: i32) -> (i32, i32) {
    %c0_i32 = arith.constant 0 : i32
    %c0_i32_0 = arith.constant 0 : i32
    %c0_i32_1 = arith.constant 0 : i32
    return %c0_i32, %c0_i32_0 : i32, i32
  }
  func.func @transform_36(%arg0: i32) -> (i32, i32) {
    %c0_i32 = arith.constant 0 : i32
    %c0_i32_0 = arith.constant 0 : i32
    %c0_i32_1 = arith.constant 0 : i32
    return %c0_i32, %c0_i32_0 : i32, i32
  }
  func.func @transform_37(%arg0: i32) -> (i32, i32) {
    %c0_i32 = arith.constant 0 : i32
    %c0_i32_0 = arith.constant 0 : i32
    %c0_i32_1 = arith.constant 0 : i32
    return %c0_i32, %c0_i32_0 : i32, i32
  }
  func.func @transform_38(%arg0: i32) -> (i32, i32) {
    %c0_i32 = arith.constant 0 : i32
    %c0_i32_0 = arith.constant 0 : i32
    %c0_i32_1 = arith.constant 0 : i32
    return %c0_i32, %c0_i32_0 : i32, i32
  }
}

</mosaic_0001>

<bundles_post_ra>
// kernel: tpu_custom_call.1
= control target key start
LH: loop header
LB: loop body
LE: loop exit
PB: predicated region body
PF: predicated region fallthrough
CT: control target
= control target key end

     0   :  { %s3880_s6 = smov 1   ;;  %s3881_s10 = smov 2   ;;  %s4529_s0 = inlined_call_operand.smem [shape: u32[39], index: -1, kind: input, shape index: {}] }
   0x1   :  { %s3942_s5 = sld [smem:[%s4529_s0]]   ;;  %s3882_s14 = smov 3  }
   0x2   :  { %s3947_s9 = sld [smem:[%s4529_s0 + %s3880_s6]]   ;;  %s3883_s18 = smov 4  }
   0x3   :  { %s3952_s13 = sld [smem:[%s4529_s0 + %s3881_s10]]   ;;  %s3884_s22 = smov 5  }
   0x4   :  { %s3957_s17 = sld [smem:[%s4529_s0 + %s3882_s14]]   ;;  %s3885_s26 = smov 6  }
   0x5   :  { %s3962_s21 = sld [smem:[%s4529_s0 + %s3883_s18]]   ;;  %s3886_s30 = smov 7  }
   0x6   :  { %s3967_s25 = sld [smem:[%s4529_s0 + %s3884_s22]]   ;;  %s3887_s4 = smov 8  }
   0x7   :  { %4544 = sst [smem:[#allocation14_spill]] %s3942_s5  ;;  %s3888_s10 = smov 9  }
   0x8   :  { %4545 = sst [smem:[#allocation15_spill]] %s3947_s9  ;;  %s3889_s15 = smov 10  }
   0x9   :  { %4546 = sst [smem:[#allocation16_spill]] %s3952_s13  ;;  %s3890_s20 = smov 11  }
   0xa   :  { %4547 = sst [smem:[#allocation17_spill]] %s3957_s17  ;;  %s3892_s1 = smov 13  }
   0xb   :  { %4548 = sst [smem:[#allocation18_spill]] %s3962_s21  ;;  %s3893_s7 = smov 14  }
   0xc   :  { %4549 = sst [smem:[#allocation19_spill]] %s3967_s25  ;;  %s3895_s22 = smov 16  }
   0xd   :  { %s3972_s29 = sld [smem:[%s4529_s0 + %s3885_s26]]   ;;  %s3891_s26 = smov 12  }
   0xe   :  { %s3977_s3 = sld [smem:[%s4529_s0 + %s3886_s30]]   ;;  %s3896_s28 = smov 17  }
   0xf   :  { %s3982_s8 = sld [smem:[%s4529_s0 + %s3887_s4]]  }
  0x10   :  { %s3987_s14 = sld [smem:[%s4529_s0 + %s3888_s10]]  }
  0x11   :  { %s3992_s19 = sld [smem:[%s4529_s0 + %s3889_s15]]   ;;  %s3894_s15 = smov 15  }
  0x12   :  { %s3997_s24 = sld [smem:[%s4529_s0 + %s3890_s20]]  }
  0x13   :  { %4550 = sst [smem:[#allocation20_spill]] %s3972_s29 }
  0x14   :  { %4551 = sst [smem:[#allocation21_spill]] %s3977_s3 }
  0x15   :  { %4552 = sst [smem:[#allocation22_spill]] %s3982_s8 }
  0x16   :  { %4553 = sst [smem:[#allocation23_spill]] %s3987_s14 }
  0x17   :  { %4554 = sst [smem:[#allocation24_spill]] %s3992_s19 }
  0x18   :  { %4555 = sst [smem:[#allocation25_spill]] %s3997_s24 }
  0x19   :  { %s4002_s30 = sld [smem:[%s4529_s0 + %s3891_s26]]  }
  0x1a   :  { %s4007_s6 = sld [smem:[%s4529_s0 + %s3892_s1]]  }
  0x1b   :  { %s4012_s12 = sld [smem:[%s4529_s0 + %s3893_s7]]   ;;  %s3897_s7 = smov 18  }
  0x1c   :  { %s4017_s20 = sld [smem:[%s4529_s0 + %s3894_s15]]   ;;  %s3898_s15 = smov 19  }
  0x1d   :  { %s4022_s27 = sld [smem:[%s4529_s0 + %s3895_s22]]   ;;  %s3899_s22 = smov 20  }
  0x1e   :  { %s4027_s4 = sld [smem:[%s4529_s0 + %s3896_s28]]   ;;  %s3900_s28 = smov 21  }
  0x1f   :  { %4556 = sst [smem:[#allocation26_spill]] %s4002_s30 }
  0x20   :  { %4557 = sst [smem:[#allocation27_spill]] %s4007_s6 }
  0x21   :  { %4558 = sst [smem:[#allocation28_spill]] %s4012_s12 }
  0x22   :  { %4559 = sst [smem:[#allocation29_spill]] %s4017_s20 }
  0x23   :  { %4560 = sst [smem:[#allocation30_spill]] %s4022_s27 }
  0x24   :  { %4561 = sst [smem:[#allocation31_spill]] %s4027_s4 }
  0x25   :  { %s4032_s25 = sld [smem:[%s4529_s0 + %s3897_s7]]   ;;  %s3901_s7 = smov 22  }
  0x26   :  { %s4037_s17 = sld [smem:[%s4529_s0 + %s3898_s15]]   ;;  %s3902_s15 = smov 23  }
  0x27   :  { %s4042_s20 = sld [smem:[%s4529_s0 + %s3899_s22]]   ;;  %s3903_s22 = smov 24  }
  0x28   :  { %s4047_s12 = sld [smem:[%s4529_s0 + %s3900_s28]]   ;;  %s3904_s28 = smov 25  }
  0x29   :  { %s4052_s13 = sld [smem:[%s4529_s0 + %s3901_s7]]   ;;  %s3905_s7 = smov 26  }
  0x2a   :  { %s4057_s6 = sld [smem:[%s4529_s0 + %s3902_s15]]   ;;  %s3906_s15 = smov 27  }
  0x2b   :  { %4562 = sst [smem:[#allocation32_spill]] %s4032_s25 }
  0x2c   :  { %4563 = sst [smem:[#allocation33_spill]] %s4037_s17 }
  0x2d   :  { %4564 = sst [smem:[#allocation34_spill]] %s4042_s20 }
  0x2e   :  { %s4062_s30 = sld [smem:[%s4529_s0 + %s3903_s22]]   ;;  %s3907_s22 = smov 28  }
  0x2f   :  { %s4067_s24 = sld [smem:[%s4529_s0 + %s3904_s28]]   ;;  %s3908_s28 = smov 29  }
  0x30   :  { %s4072_s5 = sld [smem:[%s4529_s0 + %s3905_s7]]   ;;  %s3909_s7 = smov 30  }
  0x31   :  { %s4077_s9 = sld [smem:[%s4529_s0 + %s3906_s15]]   ;;  %s3910_s15 = smov 31  }
  0x32   :  { %s4082_s29 = sld [smem:[%s4529_s0 + %s3907_s22]]   ;;  %s3911_s22 = smov 32  }
  0x33   :  { %s4087_s19 = sld [smem:[%s4529_s0 + %s3908_s28]]   ;;  %s3912_s28 = smov 33  }
  0x36   :  { %4565 = sst [smem:[#allocation35_spill]] %s4072_s5 }
  0x37   :  { %4566 = sst [smem:[#allocation36_spill]] %s4077_s9 }
  0x38   :  { %4567 = sst [smem:[#allocation37_spill]] %s4082_s29 }
  0x39   :  { %4568 = sst [smem:[#allocation38_spill]] %s4087_s19 }
  0x3a   :  { %s4092_s5 = sld [smem:[%s4529_s0 + %s3909_s7]]   ;;  %s3913_s7 = smov 34  }
  0x3b   :  { %s4097_s9 = sld [smem:[%s4529_s0 + %s3910_s15]]   ;;  %s3914_s15 = smov 35  }
  0x3c   :  { %s4102_s29 = sld [smem:[%s4529_s0 + %s3911_s22]]   ;;  %s3915_s22 = smov 36  }
  0x3d   :  { %s4107_s19 = sld [smem:[%s4529_s0 + %s3912_s28]]   ;;  %s3916_s28 = smov 37  }
  0x40   :  { %4569 = sst [smem:[#allocation39_spill]] %s4092_s5 }
  0x41   :  { %4570 = sst [smem:[#allocation40_spill]] %s4097_s9 }
  0x42   :  { %4571 = sst [smem:[#allocation41_spill]] %s4102_s29 }
  0x43   :  { %4572 = sst [smem:[#allocation42_spill]] %s4107_s19 }
  0x44   :  { %s4112_s5 = sld [smem:[%s4529_s0 + %s3913_s7]]   ;;  %s3917_s7 = smov 38  }
  0x45   :  { %s4117_s9 = sld [smem:[%s4529_s0 + %s3914_s15]]  }
  0x46   :  { %s4122_s29 = sld [smem:[%s4529_s0 + %s3915_s22]]  }
  0x47   :  { %s4127_s19 = sld [smem:[%s4529_s0 + %s3916_s28]]  }
  0x4a   :  { %4573 = sst [smem:[#allocation43_spill]] %s4112_s5 }
  0x4b   :  { %4574 = sst [smem:[#allocation44_spill]] %s4117_s9 }
  0x4c   :  { %4575 = sst [smem:[#allocation45_spill]] %s4122_s29 }
  0x4d   :  { %4576 = sst [smem:[#allocation46_spill]] %s4127_s19 }
  0x4e   :  { %s4132_s5 = sld [smem:[%s4529_s0 + %s3917_s7]]  }
  0x54   :  { %4577 = sst [smem:[#allocation47_spill]] %s4132_s5 }
  0x55   :  { %82 = vsyncpa [#allocation5], 0 }
  0x56   :  { %83 = vsyncpa [#allocation8], 0 }
  0x57   :  { %84 = vsyncpa [#allocation6], 0  ;;  %s4134_s15 = smov 0  }
  0x58 LB: > { %s4578_s21 = sld [smem:[#allocation18_spill]]  ;;  %s4579_s14 = sld [smem:[#allocation23_spill]]  ;;  %s3878_s15 = sphi %s4134_s15, %s90_s15  }
  0x59   : > { %s4580_s8 = sld [smem:[#allocation22_spill]]  ;;  %s4581_s3 = sld [smem:[#allocation21_spill]] }
  0x5a   : > { %4582 = sst [smem:[#allocation48_spill]] %s3878_s15  ;;  %s4140_s16 = sadd.s32 4294967295, %s3878_s15  }
  0x5b   : > { %p3285_p0 = scmp.ge.s32.totalorder %s3878_s15, 1  ;;  %p994_p1 = scmp.lt.s32.totalorder %s3878_s15, 3 }
  0x5c   : > { %p4535_p3 = scmp.eq.s32.totalorder %s4140_s16, 0  ;;  %s3918_s18 = smov [#allocation7]  }
  0x5d   : > { %p4146_p4 = pnand %p3285_p0, %p994_p1  ;;  %s1039_s22 = sshll.u32 %s3918_s18, 4  ;;  %s1040_s22 = int_to_ptr.vmem [resolvable:$true] %s1039_s22 }
  0x5e   : > { %s3919_s23 = smov [#allocation4]   ;;  %s3920_s28 = smov [#allocation9]  }
  0x5f   : > { %s4583_s0 = scalar_select %p4146_p4, 1, 0 }
  0x60   : > { %p3600_p5 = pneg %p4146_p4  ;;  %s1028_s26 = sshll.u32 %s3919_s23, 4  ;;  %s4158_s26 = int_to_ptr.vmem [resolvable:$true] %s1028_s26 }
  0x61   : > { %s1050_s1 = sshll.u32 %s3920_s28, 4  ;;  %s3750_s7 = scalar_lea.hbm %s4580_s8, 16  ;;  %s4160_s1 = int_to_ptr.vmem [resolvable:$true] %s1050_s1 }
  0x62   : > { %p4154_p6 = pnand %p4535_p3, %p3600_p5  ;;  %p3751_p7 = scmp.ne.s32.totalorder %s4580_s8, %s3750_s7 }
  0x63   : > { %p3757_p11 = scmp.lt.u32.totalorder %s3750_s7, %s4580_s8 }
  0x64   : > { %p4166_p8 = pneg %p4154_p6 }
  0x66   : > { %p3753_p9 = pnand %p4166_p8, %p3751_p7 }
  0x68   : > { %p3754_p10 = pneg %p3753_p9 }
  0x6a   : > { %p3759_p12 = pnand %p3757_p11, %p3754_p10 }
  0x6c   : > { %3762 = shalt.err (!%p3759_p12)
}
  0x6d   : > { %s3763_s11 = scalar_lea.vmem %s1040_s22, 16  ;;  %s3770_s18 = scalar_lea.vmem %s1040_s22, 32 }
  0x6e   : > { %p3764_p13 = scmp.ne.s32.totalorder %s1040_s22, %s3763_s11  ;;  %p3771_p5 = scmp.lt.s32.totalorder %s1040_s22, %s1040_s22 }
  0x6f   : > { %p3772_p2 = scmp.lt.s32.totalorder %s3770_s18, %s3763_s11 }
  0x70   : > { %p3766_p0 = pnand %p3764_p13, %p4166_p8 }
  0x71   : > { %p3773_p3 = por %p3772_p2, %p3771_p5 }
  0x72   : > { %p3767_p1 = pneg %p3766_p0 }
  0x74   : > { %p3774_p4 = pnand %p3773_p3, %p3767_p1 }
  0x76   : > { %3777 = shalt.err (!%p3774_p4)
}
  0x77   : > { %3606 = dma.hbm_to_vmem [thread:$0]  (!%p4154_p6), %s4580_s8, 16, %s1040_s22, [#allocation8]  }
  0x78   : > { %s3778_s23 = scalar_lea.hbm %s4581_s3, 16 }
  0x79   : > { %p3779_p7 = scmp.ne.s32.totalorder %s4581_s3, %s3778_s23  ;;  %p3785_p11 = scmp.lt.u32.totalorder %s3778_s23, %s4581_s3 }
  0x7b   : > { %p3781_p9 = pnand %p3779_p7, %p4166_p8 }
  0x7d   : > { %p3782_p10 = pneg %p3781_p9 }
  0x7f   : > { %p3787_p12 = pnand %p3785_p11, %p3782_p10 }
  0x81   : > { %3790 = shalt.err (!%p3787_p12)
}
  0x82   : > { %s3791_s28 = scalar_lea.vmem %s4158_s26, 16  ;;  %s3798_s7 = scalar_lea.vmem %s4158_s26, 32 }
  0x83   : > { %p3792_p2 = scmp.ne.s32.totalorder %s4158_s26, %s3791_s28  ;;  %p3799_p13 = scmp.lt.s32.totalorder %s4158_s26, %s4158_s26 }
  0x84   : > { %p3800_p0 = scmp.lt.s32.totalorder %s3798_s7, %s3791_s28 }
  0x85   : > { %p3794_p3 = pnand %p3792_p2, %p4166_p8 }
  0x86   : > { %p3801_p1 = por %p3800_p0, %p3799_p13 }
  0x87   : > { %p3795_p4 = pneg %p3794_p3 }
  0x89   : > { %p3802_p5 = pnand %p3801_p1, %p3795_p4 }
  0x8b   : > { %3805 = shalt.err (!%p3802_p5)
}
  0x8c   : > { %3603 = dma.hbm_to_vmem [thread:$0]  (!%p4154_p6), %s4581_s3, 16, %s4158_s26, [#allocation5]  }
  0x8d   : > { %s3806_s22 = scalar_lea.hbm %s4579_s14, 16 }
  0x8e   : > { %p3807_p7 = scmp.ne.s32.totalorder %s4579_s14, %s3806_s22  ;;  %p3813_p11 = scmp.lt.u32.totalorder %s3806_s22, %s4579_s14 }
  0x90   : > { %p3809_p9 = pnand %p3807_p7, %p4166_p8 }
  0x92   : > { %p3810_p10 = pneg %p3809_p9 }
  0x94   : > { %p3815_p12 = pnand %p3813_p11, %p3810_p10 }
  0x96   : > { %3818 = shalt.err (!%p3815_p12)
}
  0x97   : > { %s3819_s11 = scalar_lea.vmem %s4160_s1, 16  ;;  %s3826_s18 = scalar_lea.vmem %s4160_s1, 32 }
  0x98   : > { %p3820_p2 = scmp.ne.s32.totalorder %s4160_s1, %s3819_s11  ;;  %p3827_p13 = scmp.lt.s32.totalorder %s4160_s1, %s4160_s1 }
  0x99   : > { %p3828_p0 = scmp.lt.s32.totalorder %s3826_s18, %s3819_s11 }
  0x9a   : > { %p3822_p3 = pnand %p3820_p2, %p4166_p8 }
  0x9b   : > { %p3829_p1 = por %p3828_p0, %p3827_p13 }
  0x9c   : > { %p3823_p4 = pneg %p3822_p3 }
  0x9e   : > { %p3830_p5 = pnand %p3829_p1, %p3823_p4 }
  0xa0   : > { %3833 = shalt.err (!%p3830_p5)
}
  0xa1   : > { %3609 = dma.hbm_to_vmem [thread:$0]  (!%p4154_p6), %s4579_s14, 16, %s4160_s1, [#allocation8]  }
  0xa2   : > { %p4586_p7 = scmp.ne.s32.totalorder %s4583_s0, 0 }
  0xa3   : > { %p4587_p9 = scmp.eq.s32.totalorder (!%p4586_p7), %s4140_s16, 0 }
  0xa4   : > { %1207 = sbr.rel (%p4586_p7) target bundleno = 5132 (0x140c), region = 172 }
  0xab   : > { %3865 = dma.done.wait (%p4587_p9), [#allocation5], 16   ;;  %p4588_p8 = pmov %p4587_p9 }
  0xad   : > { %3867 = vsyncadd (%p4588_p8), [#allocation5], 4294967280  ;;  %p4589_p10 = pmov %p4588_p8 }
  0xae   : > { %p4590_p11 = pmov %p4588_p8 }
  0xaf   : > { %3869 = dma.done.wait (%p4589_p10), [#allocation8], 32  }
  0xb0   : > { %3871 = vsyncadd (%p4590_p11), [#allocation8], 4294967264  ;;  %s4592_s27 = sld [smem:[#allocation30_spill]]  ;;  %s4593_s25 = sld [smem:[#allocation32_spill]]  ;;  %v4239_v0 = vld [vmem:[%s4578_s21] sm:$0xff]  ;;  %v4242_v1 = vld [vmem:[%s4578_s21 + $0x8] sm:$0xff] }
  0xb1   : > { %s4595_s20 = sld [smem:[#allocation34_spill]]  ;;  %s4596_s0 = sld [smem:[#allocation35_spill]] }
  0xb2   : > { %p1359_p6 = scmp.lt.s32.totalorder %s4140_s16, 1  ;;  %s4597_s26 = sld [smem:[#allocation36_spill]] }
  0xb3   : > { %s4598_s10 = sld [smem:[#allocation37_spill]]  ;;  %s4599_s28 = sld [smem:[#allocation38_spill]] }
  0xb4   : > { %s4222_s1 = scalar_select %p1359_p6, %s4140_s16, 1 }
  0xb5   : > { %s4600_s22 = sld [smem:[#allocation39_spill]]  ;;  %s4601_s18 = sld [smem:[#allocation40_spill]] }
  0xb6   : > { %s3376_s2 = sshll.u32 %s4222_s1, 4  ;;  %s1390_s23 = scalar_lea.vmem %s4057_s6, %s4222_s1 }
  0xb7   : > { %s4228_s7 = scalar_lea.vmem %s4592_s27, %s3376_s2  ;;  %s4231_s11 = scalar_lea.vmem %s4593_s25, %s3376_s2 }
  0xb8   : > { %s4236_s8 = scalar_lea.vmem %s4595_s20, %s3376_s2  ;;  %s4247_s15 = scalar_lea.vmem %s4052_s13, %s3376_s2 }
  0xb9   : > { %s1393_s5 = scalar_lea.vmem %s4062_s30, %s4222_s1  ;;  %s1396_s27 = scalar_lea.vmem %s4067_s24, %s4222_s1 }
  0xba   : > { %s4256_s19 = scalar_lea.vmem %s4596_s0, %s3376_s2  ;;  %s1404_s9 = scalar_lea.vmem %s4597_s26, %s4222_s1 }
  0xbb   : > { %s3381_s25 = sshll.u32 %s4222_s1, 6  ;;  %s1412_s4 = scalar_lea.vmem %s4599_s28, %s4222_s1 }
  0xbc   : > { %s4262_s29 = scalar_lea.vmem %s4598_s10, %s3381_s25  ;;  %s1415_s3 = scalar_lea.vmem %s4600_s22, %s4222_s1 }
  0xbd   : > { %s1418_s20 = scalar_lea.vmem %s4601_s18, %s4222_s1  ;;  %p4602_p12 = scmp.ne.s32.totalorder %s4140_s16, 0 }
  0xbe   : > { %s4603_s21 = sld [smem:[#allocation24_spill]] (!%p4602_p12)  ;;  %s4604_s17 = sld [smem:[#allocation20_spill]] (!%p4602_p12)  ;;  %vm1558_vm0 = vcmask (!%p4602_p12), 1041408   ;;  %v3921_v3 = vmov (!%p4602_p12), 0.0   ;;  %vm3922_vm1 = vmmov (!%p4602_p12), 0   ;;  %vm1554_vm2 = vcmask (!%p4602_p12), 31744  }
  0xbf   : > { %1425 = sbr.rel (%p4602_p12) target bundleno = 1173 (0x495), region = 188  ;;  %s4605_s14 = sld [smem:[#allocation15_spill]] (!%p4602_p12)  ;;  %3444 = vmatprep.subr.bf16.mxu1 (!%p4602_p12), %v3921_v3  ;;  %3436 = vmatprep.subr.bf16.mxu0 (!%p4602_p12), %v3921_v3  ;;  %vm1452_vm3 = vcmask (!%p4602_p12), 1043456   ;;  %vm1448_vm4 = vcmask (!%p4602_p12), 195584   ;;  %vm1499_vm5 = vcmask (!%p4602_p12), 130048   ;;  %vm1657_vm6 = vcmask (!%p4602_p12), 261248  }
  0xc0   : > { %s4606_s0 = sld [smem:[#allocation14_spill]] (!%p4602_p12)  ;;  %3446 = vmatprep.mubr.msk.bf16.mxu1 (!%p4602_p12), %vm3922_vm1, %v3921_v3  ;;  %s4607_s25 = sld [smem:[#allocation25_spill]] (!%p4602_p12)  ;;  %3440 = vmatprep.mubr.msk.bf16.mxu0 (!%p4602_p12), %vm3922_vm1, %v3921_v3  ;;  %v3307_v22 = vld [vmem:[#allocation4] ss:$0 sm:$0xff] (!%p4602_p12)  ;;  %vm1667_vm7 = vcmask (!%p4602_p12), 261120  }
  0xc1   : > { %s4609_s26 = sld [smem:[#allocation27_spill]] (!%p4602_p12)  ;;  %s3923_s2 = smov (!%p4602_p12), 16  }
  0xc2   : > { %s4610_s10 = sld [smem:[#allocation16_spill]] (!%p4602_p12)  ;;  %s4611_s28 = sld [smem:[#allocation28_spill]] (!%p4602_p12) }
  0xc3   : > { %s4612_s22 = sld [smem:[#allocation29_spill]] (!%p4602_p12) }
  0xc4   : > { %v1546_v2 = vld [vmem:[%s4603_s21] sm:$0x3] (!%p4602_p12)  ;;  %v3683_v8 = vld [vmem:[%s4604_s17 + $0x8] ss:$0 sps:$4 sm:$0xff] (!%p4602_p12)   ;;  %s4608_s21 = sld [smem:[#allocation26_spill]] (!%p4602_p12) }
  0xc5   : > { %v1560_v4 = vsel (!%p4602_p12), %vm1558_vm0, %v1546_v2, 0  ;;  %v3682_v5 = vld [vmem:[%s4604_s17] sm:$0xff] (!%p4602_p12)   ;;  %v1544_v7 = vld [vmem:[%s4605_s14 + $0x8] sm:$0xff] (!%p4602_p12)  ;;  %v1454_v12 = vsel (!%p4602_p12), %vm1452_vm3, %v3683_v8, 0 }
  0xc6   : > { %v1543_v6 = vld [vmem:[%s4605_s14] sm:$0xff]  ;;  %3445 = vmatpush3.bf16.msra.mxu1 %v1560_v4  ;;  %3437 = vmatpush3.bf16.msra.mxu0 %v3682_v5  ;;  %v1427_v11 = vld [vmem:[%s4606_s0 + $0x8] sm:$0xff] }
  0xc7   : > { %v1545_v9 = vpack.c.bf16 %v1544_v7, %v1543_v6  ;;  %v1426_v10 = vld [vmem:[%s4606_s0] sm:$0xff]  ;;  %3438 = vmatprep.subr.bf16.mxu0 %v3921_v3 }
  0xc8   : > { %v1428_v13 = vpack.c.bf16 %v1427_v11, %v1426_v10  ;;  %v3313_v14 = vld [vmem:[%s4607_s25] ss:$0 sm:$0xff]  ;;  %v3311_v11 = vld [vmem:[#allocation7] ss:$0 sm:$0xff] }
  0xc9   : > { %3447 = vmatmul.mubr.msk.bf16.vlgmr.msra.gmra.mrb[0].mxu1 %vm1554_vm2, %v1545_v9  ;;  %v3316_v5 = vld [vmem:[%s4609_s26] ss:$0 sm:$0xff] }
  0xca   : > { %3439 = vmatpush3.bf16.msra.mxu0 %v1454_v12  ;;  %v3315_v3 = vld [vmem:[%s4608_s21] ss:$0 sm:$0xff] }
  0xcd   : > { %3441 = vmatmul.mubr.msk.bf16.vlgmr.msra.gmra.mrb[0].mxu0 %vm1448_vm4, %v1428_v13 }
 0x19c   : > { %v1596_v15 = vpop.f32.mrb[0].mxu1 }
 0x19d   : > { %v1597_v16 = vadd.f32 %v3313_v14, %v1596_v15  ;;  %v3448_v17 = vpop.f32.mrb[1].mxu1 }
 0x19e   : > { %v1599_v18 = vpop.f32.mrb[2].mxu1 }
 0x19f   : > { %v1600_v19 = vadd.f32 %v3313_v14, %v1599_v18  ;;  %v3449_v20 = vpop.f32.mrb[3].mxu1  ;;  %v1605_v21 = vsel %vm1499_vm5, %v1597_v16, 0.0  ;;  %v3312_v14 = vld [vmem:[#allocation9] ss:$0 sm:$0xff] }
 0x1a0   : > { %1606 = vadd.xlane.f32.xlu0 %v1605_v21  ;;  %v1490_v23 = vpop.f32.mrb[0].mxu0 }
 0x1a1   : > { %v1491_v24 = vadd.f32 %v3307_v22, %v1490_v23  ;;  %v3442_v25 = vpop.f32.mrb[1].mxu0  ;;  %v1608_v26 = vsel %vm1499_vm5, %v1600_v19, 0.0 }
 0x1a2   : > { %v1493_v27 = vpop.f32.mrb[2].mxu0 }
 0x1a3   : > { %v1500_v28 = vsel %vm1499_vm5, %v1491_v24, 0.0  ;;  %v1494_v29 = vadd.f32 %v3307_v22, %v1493_v27  ;;  %v3443_v30 = vpop.f32.mrb[3].mxu0 }
 0x1a4   : > { %1609 = vadd.xlane.f32.xlu0 %v1608_v26  ;;  %1501 = vadd.xlane.f32.xlu1 %v1500_v28 }
 0x1a5   : > { %v1503_v31 = vsel %vm1499_vm5, %v1494_v29, 0.0 }
 0x1a8   : > { %1504 = vadd.xlane.f32.xlu1 %v1503_v31  ;;  %v3924_v31 = vmov 0  }
 0x1a9   : > { %3680 = vset.pattern.permute.xlu0 %v3924_v31  ;;  %3681 = vset.pattern.permute.xlu1 %v3924_v31 }
 0x22d   : > { %v1607_v32 = vpop.xlane.xlu0 %1606 }
 0x22e   : > { %v1611_v33 = vmul.f32 0.0625, %v1607_v32 }
 0x230   : > { %v1613_v34 = vsub.f32 %v1597_v16, %v1611_v33 }
 0x231   : > { %v1610_v35 = vpop.xlane.xlu0 %1609  ;;  %v1502_v37 = vpop.xlane.xlu1 %1501 }
 0x232   : > { %v1612_v36 = vmul.f32 0.0625, %v1610_v35  ;;  %v1615_v38 = vmul.f32 %v1613_v34, %v1613_v34  ;;  %v1507_v39 = vmul.f32 0.0625, %v1502_v37 }
 0x234   : > { %v1614_v40 = vsub.f32 %v1600_v19, %v1612_v36  ;;  %v1617_v41 = vsel %vm1499_vm5, %v1615_v38, 0.0  ;;  %v1509_v42 = vsub.f32 %v1491_v24, %v1507_v39  ;;  %v1662_v24 = vld [vmem:[%s4610_s10] sm:$0xff] }
 0x235   : > { %1618 = vadd.xlane.f32.xlu0 %v1617_v41  ;;  %v1505_v43 = vpop.xlane.xlu1 %1504 }
 0x236   : > { %v1616_v44 = vmul.f32 %v1614_v40, %v1614_v40  ;;  %v1508_v45 = vmul.f32 0.0625, %v1505_v43  ;;  %v1511_v46 = vmul.f32 %v1509_v42, %v1509_v42 }
 0x238   : > { %v1620_v47 = vsel %vm1499_vm5, %v1616_v44, 0.0  ;;  %v1510_v48 = vsub.f32 %v1494_v29, %v1508_v45  ;;  %v1513_v49 = vsel %vm1499_vm5, %v1511_v46, 0.0 }
 0x239   : > { %1621 = vadd.xlane.f32.xlu1 %v1620_v47  ;;  %1514 = vadd.xlane.f32.xlu0 %v1513_v49  ;;  %v3317_v49 = vld [vmem:[%s4611_s28] ss:$0 sm:$0xff] }
 0x23a   : > { %v1512_v50 = vmul.f32 %v1510_v48, %v1510_v48 }
 0x23c   : > { %v1516_v51 = vsel %vm1499_vm5, %v1512_v50, 0.0 }
 0x23d   : > { %1517 = vadd.xlane.f32.xlu1 %v1516_v51  ;;  %v3318_v51 = vld [vmem:[%s4612_s22] ss:$0 sm:$0xff] }
 0x2c2   : > { %v1619_v52 = vpop.xlane.xlu0 %1618 }
 0x2c3   : > { %v1623_v53 = vmul.f32 0.0625, %v1619_v52 }
 0x2c5   : > { %v1625_v54 = vadd.f32 1e-12, %v1623_v53 }
 0x2c6   : > { %v1622_v55 = vpop.xlane.xlu1 %1621  ;;  %v1515_v57 = vpop.xlane.xlu0 %1514 }
 0x2c7   : > { %3684 = vrsqrt.f32 %v1625_v54  ;;  %v1624_v56 = vmul.f32 0.0625, %v1622_v55  ;;  %v1519_v58 = vmul.f32 0.0625, %v1515_v57 }
 0x2c9   : > { %v1626_v59 = vadd.f32 1e-12, %v1624_v56  ;;  %v1521_v60 = vadd.f32 1e-12, %v1519_v58 }
 0x2ca   : > { %v1518_v61 = vpop.xlane.xlu1 %1517 }
 0x2cb   : > { %3686 = vrsqrt.f32 %v1626_v59  ;;  %v1520_v62 = vmul.f32 0.0625, %v1518_v61 }
 0x2cc   : > { %3688 = vrsqrt.f32 %v1521_v60 }
 0x2cd   : > { %v1522_v63 = vadd.f32 1e-12, %v1520_v62 }
 0x2cf   : > { %3690 = vrsqrt.f32 %v1522_v63 }
 0x2d1   : > { %v3685_v2 = vpop.eup %3684 }
 0x2d2   : > { %v1629_v4 = vmul.f32 %v3685_v2, %v1613_v34 }
 0x2d4   : > { %v1637_v6 = vmul.f32 %v3315_v3, %v1629_v4 }
 0x2d5   : > { %v3687_v7 = vpop.eup %3686 }
 0x2d6   : > { %v3689_v8 = vpop.eup %3688  ;;  %v1645_v9 = vadd.f32 %v3316_v5, %v1637_v6  ;;  %v1630_v10 = vmul.f32 %v3687_v7, %v1614_v40 }
 0x2d7   : > { %v1525_v12 = vmul.f32 %v3689_v8, %v1509_v42 }
 0x2d8   : > { %1651 = vrot.lane.b32.xlu0 %v1645_v9, %s3923_s2  ;;  %v1638_v13 = vmul.f32 %v3315_v3, %v1630_v10 }
 0x2d9   : > { %v1533_v15 = vmul.f32 %v3311_v11, %v1525_v12  ;;  %v3691_v16 = vpop.eup %3690 }
 0x2da   : > { %v1646_v17 = vadd.f32 %v3316_v5, %v1638_v13  ;;  %v1526_v19 = vmul.f32 %v3691_v16, %v1510_v48 }
 0x2db   : > { %v1541_v18 = vadd.f32 %v3312_v14, %v1533_v15 }
 0x2dc   : > { %1653 = vrot.lane.b32.xlu1 %v1646_v17, %s3923_s2  ;;  %v1534_v20 = vmul.f32 %v3311_v11, %v1526_v19 }
 0x2dd   : > { %1647 = vst.msk [vmem:[#allocation2] sm:$0xff] %vm1499_vm5, %v1541_v18 }
 0x2de   : > { %v1542_v21 = vadd.f32 %v3312_v14, %v1534_v20 }
 0x2e0   : > { %1648 = vst.msk [vmem:[#allocation2 + $0x8] sm:$0xff] %vm1499_vm5, %v1542_v21 }
 0x34a   : > { %v1652_v22 = vpop.permute.xlu0 %1651 }
 0x34b   : > { %1658 = vst.msk [vmem:[#allocation2] sm:$0xff] %vm1657_vm6, %v1652_v22 }
 0x34e   : > { %v1654_v23 = vpop.permute.xlu1 %1653 }
 0x34f   : > { %1659 = vst.msk [vmem:[#allocation2 + $0x8] sm:$0xff] %vm1657_vm6, %v1654_v23 }
 0x352   : > { %v1660_v25 = vld [vmem:[#allocation2] sm:$0xff] }
 0x353   : > { %v1663_v26 = vadd.f32 %v1662_v24, %v1660_v25 }
 0x355   : > { %v1668_v27 = vsel %vm1667_vm7, %v1663_v26, 0.0 }
 0x356   : > { %1669 = vadd.xlane.f32.xlu1 %v1668_v27  ;;  %v1661_v28 = vld [vmem:[#allocation2 + $0x8] sm:$0xff] }
 0x357   : > { %v1664_v29 = vadd.f32 %v1662_v24, %v1661_v28 }
 0x359   : > { %v1671_v30 = vsel %vm1667_vm7, %v1664_v29, 0.0 }
 0x35a   : > { %1672 = vadd.xlane.f32.xlu0 %v1671_v30 }
 0x3e3   : > { %v1670_v32 = vpop.xlane.xlu1 %1669 }
 0x3e4   : > { %v1675_v33 = vmul.f32 0.03125, %v1670_v32 }
 0x3e6   : > { %v1677_v34 = vsub.f32 %v1663_v26, %v1675_v33 }
 0x3e7   : > { %v1673_v35 = vpop.xlane.xlu0 %1672 }
 0x3e8   : > { %v1676_v36 = vmul.f32 0.03125, %v1673_v35  ;;  %v1679_v37 = vmul.f32 %v1677_v34, %v1677_v34 }
 0x3ea   : > { %v1678_v38 = vsub.f32 %v1664_v29, %v1676_v36  ;;  %v1681_v39 = vsel %vm1667_vm7, %v1679_v37, 0.0 }
 0x3eb   : > { %1682 = vadd.xlane.f32.xlu0 %v1681_v39 }
 0x3ec   : > { %v1680_v40 = vmul.f32 %v1678_v38, %v1678_v38 }
 0x3ee   : > { %v1684_v41 = vsel %vm1667_vm7, %v1680_v40, 0.0 }
 0x3ef   : > { %1685 = vadd.xlane.f32.xlu1 %v1684_v41 }
 0x400   : > { %1718 = vperm.xlu1 %3681, %v4242_v1  }
 0x401   : > { %1713 = vperm.xlu0 %3680, %v4239_v0  }
 0x478   : > { %v1683_v42 = vpop.xlane.xlu0 %1682 }
 0x479   : > { %v1687_v43 = vmul.f32 0.03125, %v1683_v42 }
 0x47b   : > { %v1689_v44 = vadd.f32 1e-12, %v1687_v43 }
 0x47c   : > { %v1686_v45 = vpop.xlane.xlu1 %1685 }
 0x47d   : > { %3692 = vrsqrt.f32 %v1689_v44  ;;  %v1688_v46 = vmul.f32 0.03125, %v1686_v45 }
 0x47f   : > { %v1690_v47 = vadd.f32 1e-12, %v1688_v46 }
 0x480   : > { %v1714_v54 = vpop.permute.xlu0 %1713  ;;  %v1719_v59 = vpop.permute.xlu1 %1718 }
 0x481   : > { %3694 = vrsqrt.f32 %v1690_v47 }
 0x487   : > { %v3693_v48 = vpop.eup %3692 }
 0x488   : > { %v1693_v50 = vmul.f32 %v3693_v48, %v1677_v34 }
 0x48a   : > { %v1701_v52 = vmul.f32 %v3317_v49, %v1693_v50 }
 0x48b   : > { %v3695_v53 = vpop.eup %3694 }
 0x48c   : > { %v1709_v55 = vadd.f32 %v3318_v51, %v1701_v52  ;;  %v1694_v56 = vmul.f32 %v3695_v53, %v1678_v38 }
 0x48e   : > { %v1721_v57 = vmul.f32 %v1714_v54, %v1709_v55  ;;  %v1702_v58 = vmul.f32 %v3317_v49, %v1694_v56 }
 0x490   : > { %1723 = vst.msk [vmem:[#allocation2] sm:$0xff] %vm1667_vm7, %v1721_v57  ;;  %v1710_v60 = vadd.f32 %v3318_v51, %v1702_v58 }
 0x492   : > { %v1722_v61 = vmul.f32 %v1719_v59, %v1710_v60 }
 0x494   : > { %1724 = vst.msk [vmem:[#allocation2 + $0x8] sm:$0xff] %vm1667_vm7, %v1722_v61 }
 0x495 PF: > { %v3698_v62 = vld [vmem:[%s4228_s7] sm:$0xff]   ;;  %v3925_v63 = vmov 0.0   ;;  %v3699_v2 = vld [vmem:[%s4228_s7 + $0x8] sm:$0xff]   ;;  %vm3926_vm8 = vmmov 0   ;;  %vm1751_vm9 = vcmask 261120   ;;  %s4613_s7 = sld [smem:[#allocation33_spill]]  ;;  %s4617_s21 = scalar_lea.vmem %s4047_s12, %s4222_s1  ;;  %v2031_v42 = vlaneseq }
 0x496   : > { %3450 = vmatprep.subr.bf16.mxu0 %v3925_v63  ;;  %3474 = vmatprep.subr.bf16.mxu1 %v3925_v63  ;;  %v3700_v5 = vld [vmem:[%s4231_s11] sm:$0xff]   ;;  %v3701_v7 = vld [vmem:[%s4231_s11 + $0x8] sm:$0xff]   ;;  %s4614_s11 = sld [smem:[#allocation31_spill]]  ;;  %vm1934_vm10 = vcmask 130048   ;;  %s3927_s25 = smov 112   ;;  %vm2071_vm11 = vcmask 1043456  }
 0x497   : > { %3451 = vmatpush3.bf16.msra.mxu0 %v3698_v62  ;;  %3454 = vmatprep.mubr.msk.bf16.mxu0 %vm3926_vm8, %v3925_v63  ;;  %v4309_v3 = vld [vmem:[#allocation2] sm:$0xff]  ;;  %v3703_v9 = vld [vmem:[%s4236_s8 + $0x8] sm:$0xff]   ;;  %s4618_s26 = sld [smem:[#allocation17_spill]]  ;;  %v3928_v41 = vmov 0   ;;  %v2032_v44 = vshrl.u32 %v2031_v42, 7  ;;  %vm2043_vm15 = vcmask 64512  }
 0x498   : > { %3452 = vmatprep.subr.bf16.mxu0 %v3925_v63  ;;  %3476 = vmatprep.mubr.msk.bf16.mxu1 %vm3926_vm8, %v3925_v63  ;;  %v3702_v8 = vld [vmem:[%s4236_s8] sm:$0xff]   ;;  %s3929_s2 = smov 16   ;;  %vm2401_vm1 = vcmask 261248   ;;  %p3360_p2 = scmp.ne.s32.totalorder %s4140_s16, 1 }
 0x499   : > { %v3327_v30 = vld [vmem:[%s4617_s21] ss:$0 sm:$0xff]  ;;  %3696 = vset.pattern.permute.xlu0 %v3928_v41  ;;  %3697 = vset.pattern.permute.xlu1 %v3928_v41  ;;  %v2033_v46 = vsub.s32 0, %v2032_v44  ;;  %vm3931_vm2 = vmmov (!%p3360_p2), 0   ;;  %vm2921_vm3 = vcmask (!%p3360_p2), 254976   ;;  %vm3017_vm4 = vcmask (!%p3360_p2), 17408  }
 0x49b   : > { %v4311_v4 = vld [vmem:[#allocation2 + $0x8] sm:$0xff]  ;;  %3453 = vmatpush3.bf16.msra.mxu0 %v3699_v2  ;;  %s4615_s18 = scalar_lea.vmem %s4613_s7, %s4222_s1 }
 0x49c   : > { %v1727_v6 = vpack.c.bf16 %v4311_v4, %v4309_v3  ;;  %3458 = vmatprep.subr.bf16.mxu0 %v3925_v63  ;;  %v3323_v14 = vld [vmem:[%s4615_s18] ss:$0 sm:$0xff]  ;;  %s4616_s8 = scalar_lea.vmem %s4614_s11, %s4222_s1  ;;  %s4628_s1 = sld [smem:[#allocation44_spill]] (!%p3360_p2) }
 0x49d   : > { %v3319_v22 = vld [vmem:[%s4616_s8] ss:$0 sm:$0xff]  ;;  %v1931_v45 = vld [vmem:[%s4618_s26 + $0x1] sm:$0x1] }
 0x49e   : > { %3455 = vmatmul.mubr.msk.bf16.vlgmr.msra.gmra.mrb[0].mxu0 %vm1751_vm9, %v1727_v6  ;;  %v1930_v43 = vld [vmem:[%s4618_s26] sm:$0x1]  ;;  %vm1933_vm13 = vcmp.eq.f32.partialorder %v1931_v45, 0.0 }
 0x49f   : > { %3459 = vmatpush3.bf16.msra.mxu0 %v3700_v5  ;;  %3462 = vmatprep.mubr.msk.bf16.mxu0 %vm3926_vm8, %v3925_v63  ;;  %vm1932_vm12 = vcmp.eq.f32.partialorder %v1930_v43, 0.0  ;;  %v2030_v48 = vsel %vm1933_vm13, 1, %v3928_v41 }
 0x4a0   : > { %3460 = vmatprep.subr.bf16.mxu0 %v3925_v63  ;;  %v2029_v47 = vsel %vm1932_vm12, 1, %v3928_v41  ;;  %v4379_v50 = vrot.slane %v2030_v48, %v2033_v46 }
 0x4a1   : > { %v4377_v49 = vrot.slane %v2029_v47, %v2033_v46 }
 0x4a2   : > { %vm2040_vm0 = vcmp.eq.s32.totalorder %v4379_v50, 1 }
 0x4a3   : > { %3461 = vmatpush3.bf16.msra.mxu0 %v3701_v7  ;;  %vm2039_vm14 = vcmp.eq.s32.totalorder %v4377_v49, 1 }
 0x4a4   : > { %3466 = vmatprep.subr.bf16.mxu0 %v3925_v63 }
 0x4a6   : > { %3463 = vmatmul.mubr.msk.bf16.vlgmr.msra.gmra.mrb[4].mxu0 %vm1751_vm9, %v1727_v6 }
 0x4a7   : > { %3470 = vmatprep.mubr.msk.bf16.mxu0 %vm3926_vm8, %v3925_v63  ;;  %3467 = vmatpush3.bf16.msra.mxu0 %v3702_v8 }
 0x4a8   : > { %3468 = vmatprep.subr.bf16.mxu0 %v3925_v63 }
 0x4ab   : > { %3469 = vmatpush3.bf16.msra.mxu0 %v3703_v9 }
 0x4ac   : > { %3480 = vmatprep.subr.bf16.mxu0 %v3925_v63 }
 0x4ae   : > { %3471 = vmatmul.mubr.msk.bf16.vlgmr.msra.gmra.mrb[8].mxu0 %vm1751_vm9, %v1727_v6 }
 0x4af   : > { %3482 = vmatprep.mubr.msk.bf16.mxu0 %vm3926_vm8, %v3925_v63 }
 0x571   : > { %v1789_v10 = vpop.f32.mrb[0].mxu0 }
 0x572   : > { %v3456_v11 = vpop.f32.mrb[1].mxu0  ;;  %v1790_v25 = vadd.f32 %v3319_v22, %v1789_v10 }
 0x573   : > { %v1792_v12 = vpop.f32.mrb[2].mxu0 }
 0x574   : > { %v3457_v13 = vpop.f32.mrb[3].mxu0  ;;  %v1793_v27 = vadd.f32 %v3319_v22, %v1792_v12  ;;  %v4350_v28 = vpack.c.bf16 %v1790_v25, %v1790_v25 }
 0x576   : > { %v4352_v29 = vpack.c.bf16 %v1793_v27, %v1793_v27 }
 0x579   : > { %v1853_v15 = vpop.f32.mrb[4].mxu0 }
 0x57a   : > { %v1854_v16 = vadd.f32 %v3323_v14, %v1853_v15  ;;  %v3464_v17 = vpop.f32.mrb[5].mxu0 }
 0x57b   : > { %v1856_v18 = vpop.f32.mrb[6].mxu0 }
 0x57c   : > { %v4339_v19 = vpack.c.bf16 %v1854_v16, %v1854_v16  ;;  %v1857_v20 = vadd.f32 %v3323_v14, %v1856_v18  ;;  %v3465_v21 = vpop.f32.mrb[7].mxu0 }
 0x57e   : > { %v1927_v23 = vpack.c.bf16 %v1857_v20, %v1857_v20  ;;  %v1939_v24 = vsel %vm1934_vm10, %v4339_v19, 0 }
 0x57f   : > { %3475 = vmatpush3.bf16.xpose.msra.mxu1 %v1939_v24 }
 0x580   : > { %v1985_v26 = vsel %vm1934_vm10, %v1927_v23, 0  ;;  %2219 = vrot.lane.b32.xlu1 %v1927_v23, %s3927_s25  ;;  %3486 = vmatprep.subr.bf16.mxu1 %v3925_v63 }
 0x581   : > { %3481 = vmatpush3.bf16.xpose.msra.mxu0 %v1985_v26  ;;  %v1917_v31 = vpop.f32.mrb[8].mxu0 }
 0x582   : > { %3492 = vmatprep.subr.bf16.mxu0 %v3925_v63  ;;  %v1918_v32 = vadd.f32 %v3327_v30, %v1917_v31  ;;  %v3472_v33 = vpop.f32.mrb[9].mxu0 }
 0x583   : > { %v1920_v34 = vpop.f32.mrb[10].mxu0 }
 0x584   : > { %v4365_v35 = vpack.c.bf16 %v1918_v32, %v1918_v32  ;;  %v1921_v36 = vadd.f32 %v3327_v30, %v1920_v34  ;;  %v3473_v37 = vpop.f32.mrb[11].mxu0 }
 0x586   : > { %3477 = vmatmul.mubr.msk.bf16.vlgmr.msra.gmra.mrb[0].mxu1 %vm1934_vm10, %v4350_v28  ;;  %v2073_v38 = vsel %vm2071_vm11, %v4365_v35, 0  ;;  %v4369_v39 = vpack.c.bf16 %v1921_v36, %v1921_v36 }
 0x587   : > { %3488 = vmatprep.mubr.msk.bf16.mxu1 %vm3926_vm8, %v3925_v63  ;;  %3487 = vmatpush3.bf16.msra.mxu1 %v2073_v38 }
 0x588   : > { %3483 = vmatmul.mubr.msk.bf16.vlgmr.msra.gmra.mrb[12].mxu0 %vm1934_vm10, %v4352_v29  ;;  %v2119_v40 = vsel %vm2071_vm11, %v4369_v39, 0  ;;  %3498 = vmatprep.subr.bf16.mxu1 %v3925_v63 }
 0x589   : > { %3494 = vmatprep.mubr.msk.bf16.mxu0 %vm3926_vm8, %v3925_v63  ;;  %3493 = vmatpush3.bf16.msra.mxu0 %v2119_v40 }
 0x58a   : > { %3504 = vmatprep.subr.bf16.mxu0 %v3925_v63 }
 0x5f2   : > { %v2220_v16 = vpop.permute.xlu1 %2219 }
 0x5f3   : > { %v2225_v27 = vsel %vm1934_vm10, %v2220_v16, 0  ;;  %v3705_v16 = vld [vmem:[%s4247_s15 + $0x8] sm:$0xff]  }
 0x659   : > { %v1975_v51 = vpop.f32.mrb[0].mxu1 }
 0x65a   : > { %v2027_v52 = vmul.f32 0.25, %v1975_v51  ;;  %v3478_v53 = vpop.f32.mrb[1].mxu1 }
 0x65b   : > { %v1978_v54 = vpop.f32.mrb[2].mxu1  ;;  %v2021_v55 = vpop.f32.mrb[12].mxu0 }
 0x65c   : > { %v2028_v56 = vmul.f32 0.25, %v2021_v55  ;;  %v3479_v57 = vpop.f32.mrb[3].mxu1  ;;  %v3484_v58 = vpop.f32.mrb[13].mxu0  ;;  %v2041_v59 = vsel %vm2039_vm14, -3.4028235e+38, %v2027_v52 }
 0x65d   : > { %v2024_v60 = vpop.f32.mrb[14].mxu0  ;;  %v2044_v61 = vsel %vm2043_vm15, %v2041_v59, -inf }
 0x65e   : > { %2045 = vmax.xlane.f32.xlu0 %v2044_v61  ;;  %v3485_v62 = vpop.f32.mrb[15].mxu0  ;;  %v2042_v2 = vsel %vm2040_vm0, -3.4028235e+38, %v2028_v56 }
 0x65f   : > { %v2047_v5 = vsel %vm2043_vm15, %v2042_v2, -inf }
 0x662   : > { %2048 = vmax.xlane.f32.xlu0 %v2047_v5 }
 0x678   : > { %2167 = vrot.lane.b32.xlu0 %v4339_v19, %s3927_s25 }
 0x6eb   : > { %v2046_v6 = vpop.xlane.xlu0 %2045 }
 0x6ec   : > { %v2050_v7 = vsub.f32 %v2041_v59, %v2046_v6 }
 0x6ee   : > { %v2052_v8 = vmul.f32 1.442695, %v2050_v7 }
 0x6ef   : > { %v2049_v9 = vpop.xlane.xlu0 %2048 }
 0x6f0   : > { %3716 = vpow2.f32 %v2052_v8  ;;  %v2051_v10 = vsub.f32 %v2042_v2, %v2049_v9 }
 0x6f2   : > { %v2054_v11 = vmul.f32 1.442695, %v2051_v10 }
 0x6f3   : > { %v2168_v21 = vpop.permute.xlu0 %2167 }
 0x6f4   : > { %3718 = vpow2.f32 %v2054_v11  ;;  %v2173_v24 = vsel %vm1934_vm10, %v2168_v21, 0 }
 0x6fa   : > { %v3717_v12 = vpop.eup %3716 }
 0x6fb   : > { %v2056_v13 = vsel %vm2043_vm15, %v3717_v12, 0.0 }
 0x6fc   : > { %2057 = vadd.xlane.f32.xlu1 %v2056_v13 }
 0x6fe   : > { %v3719_v14 = vpop.eup %3718 }
 0x6ff   : > { %v2059_v15 = vsel %vm2043_vm15, %v3719_v14, 0.0 }
 0x700   : > { %2060 = vadd.xlane.f32.xlu1 %v2059_v15  ;;  %v3704_v15 = vld [vmem:[%s4247_s15] sm:$0xff]   ;;  %s4627_s15 = sld [smem:[#allocation43_spill]] (!%p3360_p2) }
 0x711   : > { %2164 = vrot.lane.b32.xlu1 %v4350_v28, %s3927_s25 }
 0x715   : > { %2216 = vrot.lane.b32.xlu1 %v4352_v29, %s3927_s25 }
 0x789   : > { %v2058_v17 = vpop.xlane.xlu1 %2057 }
 0x78a   : > { %3720 = vrcp.f32 %v2058_v17 }
 0x78d   : > { %v2061_v18 = vpop.xlane.xlu1 %2060 }
 0x78e   : > { %3722 = vrcp.f32 %v2061_v18 }
 0x791   : > { %v2165_v28 = vpop.permute.xlu1 %2164 }
 0x794   : > { %v3721_v19 = vpop.eup %3720 }
 0x795   : > { %v2064_v20 = vmul.f32 %v3721_v19, %v3717_v12  ;;  %v2217_v29 = vpop.permute.xlu1 %2216 }
 0x797   : > { %v2066_v22 = vpack.c.bf16 %v2064_v20, %v2064_v20 }
 0x798   : > { %v3723_v23 = vpop.eup %3722 }
 0x799   : > { %v2065_v25 = vmul.f32 %v3723_v23, %v3719_v14  ;;  %3489 = vmatmul.mubr.msk.bf16.vlgmr.msra.gmra.mrb[4].mxu1 %vm2043_vm15, %v2066_v22 }
 0x79a   : > { %3499 = vmatpush3.bf16.xpose.msra.mxu1 %v2173_v24  ;;  %3500 = vmatprep.mubr.msk.bf16.mxu1 %vm3926_vm8, %v3925_v63 }
 0x79b   : > { %v2067_v26 = vpack.c.bf16 %v2065_v25, %v2065_v25  ;;  %3510 = vmatprep.subr.bf16.mxu1 %v3925_v63 }
 0x79d   : > { %3495 = vmatmul.mubr.msk.bf16.vlgmr.msra.gmra.mrb[16].mxu0 %vm2043_vm15, %v2067_v26 }
 0x79e   : > { %3505 = vmatpush3.bf16.xpose.msra.mxu0 %v2225_v27  ;;  %3506 = vmatprep.mubr.msk.bf16.mxu0 %vm3926_vm8, %v3925_v63 }
 0x79f   : > { %3516 = vmatprep.subr.bf16.mxu0 %v3925_v63 }
 0x7a1   : > { %3501 = vmatmul.mubr.msk.bf16.vlgmr.msra.gmra.mrb[8].mxu1 %vm1934_vm10, %v2165_v28 }
 0x7a2   : > { %3512 = vmatprep.mubr.msk.bf16.mxu1 %vm3926_vm8, %v3925_v63 }
 0x7a5   : > { %3507 = vmatmul.mubr.msk.bf16.vlgmr.msra.gmra.mrb[20].mxu0 %vm1934_vm10, %v2217_v29 }
 0x7a6   : > { %3518 = vmatprep.mubr.msk.bf16.mxu0 %vm3926_vm8, %v3925_v63 }
 0x86c   : > { %v2109_v30 = vpop.f32.mrb[4].mxu1 }
 0x86d   : > { %2161 = vst.msk [vmem:[#allocation3] sm:$0xff] %vm1934_vm10, %v2109_v30  ;;  %v3490_v31 = vpop.f32.mrb[5].mxu1  ;;  %v3339_v30 = vld [vmem:[%s1390_s23] ss:$0 sm:$0xff]  ;;  %s4629_s23 = sld [smem:[#allocation46_spill]] (!%p3360_p2) }
 0x86e   : > { %v2112_v32 = vpop.f32.mrb[6].mxu1 }
 0x86f   : > { %v3491_v33 = vpop.f32.mrb[7].mxu1 }
 0x870   : > { %v2155_v34 = vpop.f32.mrb[16].mxu0 }
 0x871   : > { %2162 = vst.msk [vmem:[#allocation3 + $0x8] sm:$0xff] %vm1934_vm10, %v2155_v34  ;;  %v3496_v36 = vpop.f32.mrb[17].mxu0 }
 0x872   : > { %v2158_v37 = vpop.f32.mrb[18].mxu0 }
 0x873   : > { %v3497_v38 = vpop.f32.mrb[19].mxu0 }
 0x874   : > { %v2209_v40 = vpop.f32.mrb[8].mxu1 }
 0x875   : > { %v2267_v41 = vmul.f32 0.25, %v2209_v40  ;;  %v3502_v42 = vpop.f32.mrb[9].mxu1 }
 0x876   : > { %v2212_v43 = vpop.f32.mrb[10].mxu1 }
 0x877   : > { %v3503_v44 = vpop.f32.mrb[11].mxu1  ;;  %v2269_v45 = vsel %vm2039_vm14, -3.4028235e+38, %v2267_v41 }
 0x878   : > { %v2261_v46 = vpop.f32.mrb[20].mxu0  ;;  %v2271_v47 = vsel %vm2043_vm15, %v2269_v45, -inf }
 0x879   : > { %v2268_v48 = vmul.f32 0.25, %v2261_v46  ;;  %2272 = vmax.xlane.f32.xlu0 %v2271_v47  ;;  %v3508_v51 = vpop.f32.mrb[21].mxu0 }
 0x87a   : > { %v2264_v52 = vpop.f32.mrb[22].mxu0 }
 0x87b   : > { %v3509_v53 = vpop.f32.mrb[23].mxu0  ;;  %v2270_v54 = vsel %vm2040_vm0, -3.4028235e+38, %v2268_v48 }
 0x87c   : > { %v2274_v55 = vsel %vm2043_vm15, %v2270_v54, -inf  ;;  %v3706_v53 = vld [vmem:[%s4256_s19] sm:$0xff]  }
 0x87d   : > { %2275 = vmax.xlane.f32.xlu1 %v2274_v55  ;;  %v3708_v55 = vld [vmem:[%s4262_s29] sm:$0xff]  }
 0x88e   : > { %2345 = vrot.lane.b32.xlu1 %v4369_v39, %s3927_s25 }
 0x906   : > { %v2273_v56 = vpop.xlane.xlu0 %2272 }
 0x907   : > { %v2277_v49 = vsub.f32 %v2269_v45, %v2273_v56  ;;  %v3709_v56 = vld [vmem:[%s4262_s29 + $0x8] sm:$0xff]  }
 0x909   : > { %v2279_v57 = vmul.f32 1.442695, %v2277_v49 }
 0x90a   : > { %v2276_v58 = vpop.xlane.xlu1 %2275 }
 0x90b   : > { %3724 = vpow2.f32 %v2279_v57  ;;  %v2278_v59 = vsub.f32 %v2270_v54, %v2276_v58  ;;  %v3707_v54 = vld [vmem:[%s4256_s19 + $0x8] sm:$0xff]  }
 0x90d   : > { %v2281_v60 = vmul.f32 1.442695, %v2278_v59 }
 0x90e   : > { %v2346_v61 = vpop.permute.xlu1 %2345 }
 0x90f   : > { %3726 = vpow2.f32 %v2281_v60  ;;  %v2351_v62 = vsel %vm2071_vm11, %v2346_v61, 0 }
 0x910   : > { %3517 = vmatpush3.bf16.msra.mxu0 %v2351_v62 }
 0x911   : > { %3530 = vmatprep.subr.bf16.mxu0 %v3925_v63 }
 0x915   : > { %v3725_v50 = vpop.eup %3724 }
 0x916   : > { %v2283_v2 = vsel %vm2043_vm15, %v3725_v50, 0.0 }
 0x917   : > { %2284 = vadd.xlane.f32.xlu0 %v2283_v2  ;;  %v3343_v2 = vld [vmem:[%s1393_s5] ss:$0 sm:$0xff] }
 0x919   : > { %v3727_v5 = vpop.eup %3726 }
 0x91a   : > { %v2286_v39 = vsel %vm2043_vm15, %v3727_v5, 0.0 }
 0x91b   : > { %2287 = vadd.xlane.f32.xlu0 %v2286_v39 }
 0x931   : > { %2296 = vrot.lane.b32.xlu0 %v4365_v35, %s3927_s25 }
 0x9a4   : > { %v2285_v6 = vpop.xlane.xlu0 %2284 }
 0x9a5   : > { %3728 = vrcp.f32 %v2285_v6 }
 0x9a8   : > { %v2288_v7 = vpop.xlane.xlu0 %2287 }
 0x9a9   : > { %3730 = vrcp.f32 %v2288_v7  ;;  %v3344_v7 = vld [vmem:[%s1396_s27] ss:$0 sm:$0xff]  ;;  %s4624_s27 = sld [smem:[#allocation19_spill]] (!%p3360_p2) }
 0x9ac   : > { %v2297_v8 = vpop.permute.xlu0 %2296 }
 0x9ad   : > { %v2302_v9 = vsel %vm2071_vm11, %v2297_v8, 0 }
 0x9ae   : > { %3511 = vmatpush3.bf16.msra.mxu1 %v2302_v9 }
 0x9af   : > { %v3729_v10 = vpop.eup %3728  ;;  %3522 = vmatprep.subr.bf16.mxu1 %v3925_v63 }
 0x9b0   : > { %v2291_v11 = vmul.f32 %v3729_v10, %v3725_v50 }
 0x9b2   : > { %v2293_v12 = vpack.c.bf16 %v2291_v11, %v2291_v11 }
 0x9b3   : > { %v3731_v13 = vpop.eup %3730 }
 0x9b4   : > { %v2292_v14 = vmul.f32 %v3731_v13, %v3727_v5  ;;  %3513 = vmatmul.mubr.msk.bf16.vlgmr.msra.gmra.mrb[12].mxu1 %vm2043_vm15, %v2293_v12  ;;  %v3710_v12 = vld [vmem:[%s4262_s29 + $0x10] sm:$0xff]   ;;  %v3711_v13 = vld [vmem:[%s4262_s29 + $0x18] sm:$0xff]  }
 0x9b5   : > { %3526 = vmatprep.mubr.msk.bf16.mxu1 %vm3926_vm8, %v3925_v63  ;;  %3523 = vmatpush3.bf16.msra.mxu1 %v3704_v15  ;;  %v3714_v15 = vld [vmem:[%s4262_s29 + $0x30] sm:$0xff]  }
 0x9b6   : > { %v2294_v35 = vpack.c.bf16 %v2292_v14, %v2292_v14  ;;  %3524 = vmatprep.subr.bf16.mxu1 %v3925_v63  ;;  %v3712_v14 = vld [vmem:[%s4262_s29 + $0x20] sm:$0xff]  }
 0x9b8   : > { %3519 = vmatmul.mubr.msk.bf16.vlgmr.msra.gmra.mrb[24].mxu0 %vm2043_vm15, %v2294_v35  ;;  %v3713_v35 = vld [vmem:[%s4262_s29 + $0x28] sm:$0xff]  }
 0x9b9   : > { %3534 = vmatprep.mubr.msk.bf16.mxu0 %vm3926_vm8, %v3925_v63  ;;  %3525 = vmatpush3.bf16.msra.mxu1 %v3705_v16  ;;  %v3715_v16 = vld [vmem:[%s4262_s29 + $0x38] sm:$0xff]  }
 0x9ba   : > { %3538 = vmatprep.subr.bf16.mxu1 %v3925_v63  ;;  %3531 = vmatpush3.bf16.msra.mxu0 %v3706_v53 }
 0x9bb   : > { %3532 = vmatprep.subr.bf16.mxu0 %v3925_v63 }
 0x9be   : > { %3533 = vmatpush3.bf16.msra.mxu0 %v3707_v54 }
 0xa87   : > { %v2338_v17 = vpop.f32.mrb[12].mxu1 }
 0xa88   : > { %2395 = vrot.lane.b32.xlu1 %v2338_v17, %s3929_s2  ;;  %v3514_v18 = vpop.f32.mrb[13].mxu1  ;;  %v3345_v17 = vld [vmem:[%s1404_s9] ss:$0 sm:$0xff] }
 0xa89   : > { %v2341_v19 = vpop.f32.mrb[14].mxu1 }
 0xa8a   : > { %v3515_v20 = vpop.f32.mrb[15].mxu1 }
 0xa8b   : > { %v2387_v21 = vpop.f32.mrb[24].mxu0 }
 0xa8c   : > { %2397 = vrot.lane.b32.xlu1 %v2387_v21, %s3929_s2  ;;  %v3520_v22 = vpop.f32.mrb[25].mxu0 }
 0xa8d   : > { %v2390_v23 = vpop.f32.mrb[26].mxu0 }
 0xa8e   : > { %v3521_v24 = vpop.f32.mrb[27].mxu0 }
 0xafa   : > { %v2396_v25 = vpop.permute.xlu1 %2395 }
 0xafb   : > { %2402 = vst.msk [vmem:[#allocation3] sm:$0xff] %vm2401_vm1, %v2396_v25 }
 0xafe   : > { %v2398_v26 = vpop.permute.xlu1 %2397 }
 0xaff   : > { %2403 = vst.msk [vmem:[#allocation3 + $0x8] sm:$0xff] %vm2401_vm1, %v2398_v26 }
 0xb02   : > { %v2404_v27 = vld [vmem:[#allocation3] sm:$0xff] }
 0xb06   : > { %v2405_v28 = vld [vmem:[#allocation3 + $0x8] sm:$0xff] }
 0xb07   : > { %v2406_v29 = vpack.c.bf16 %v2405_v28, %v2404_v27 }
 0xb09   : > { %3527 = vmatmul.mubr.msk.bf16.vlgmr.msra.gmra.mrb[16].mxu1 %vm1751_vm9, %v2406_v29 }
 0xb0a   : > { %3554 = vmatprep.mubr.msk.bf16.mxu1 %vm3926_vm8, %v3925_v63  ;;  %3539 = vmatpush3.bf16.msra.mxu1 %v3708_v55 }
 0xb0b   : > { %3540 = vmatprep.subr.bf16.mxu1 %v3925_v63 }
 0xb0e   : > { %3541 = vmatpush3.bf16.msra.mxu1 %v3709_v56 }
 0xb0f   : > { %3542 = vmatprep.subr.bf16.mxu1 %v3925_v63 }
 0xb12   : > { %3543 = vmatpush3.bf16.msra.mxu1 %v3710_v12 }
 0xb13   : > { %3544 = vmatprep.subr.bf16.mxu1 %v3925_v63 }
 0xb16   : > { %3545 = vmatpush3.bf16.msra.mxu1 %v3711_v13 }
 0xb17   : > { %3546 = vmatprep.subr.bf16.mxu1 %v3925_v63 }
 0xb1a   : > { %3547 = vmatpush3.bf16.msra.mxu1 %v3712_v14 }
 0xb1b   : > { %3548 = vmatprep.subr.bf16.mxu1 %v3925_v63 }
 0xb1e   : > { %3549 = vmatpush3.bf16.msra.mxu1 %v3713_v35 }
 0xb1f   : > { %3550 = vmatprep.subr.bf16.mxu1 %v3925_v63 }
 0xb22   : > { %3551 = vmatpush3.bf16.msra.mxu1 %v3714_v15  ;;  %v3930_v15 = vmov (!%p3360_p2), 0.0|0.0  }
 0xb23   : > { %3552 = vmatprep.subr.bf16.mxu1 %v3925_v63  ;;  %3581 = vmatprep.subr.bf16.mxu0 (!%p3360_p2), %v3930_v15 }
 0xb26   : > { %3553 = vmatpush3.bf16.msra.mxu1 %v3715_v16 }
 0xbdc   : > { %v2467_v31 = vpop.f32.mrb[16].mxu1 }
 0xbdd   : > { %v2468_v32 = vadd.f32 %v3339_v30, %v2467_v31  ;;  %v3528_v33 = vpop.f32.mrb[17].mxu1 }
 0xbde   : > { %v2470_v34 = vpop.f32.mrb[18].mxu1 }
 0xbdf   : > { %v2471_v36 = vadd.f32 %v3339_v30, %v2470_v34  ;;  %v3529_v37 = vpop.f32.mrb[19].mxu1  ;;  %v2474_v38 = vadd.f32 %v2468_v32, %v4309_v3  ;;  %v3349_v34 = vld [vmem:[%s1412_s4] ss:$0 sm:$0xff]  ;;  %s4626_s4 = sld [smem:[#allocation45_spill]] (!%p3360_p2) }
 0xbe1   : > { %v2478_v40 = vsel %vm1751_vm9, %v2474_v38, 0.0  ;;  %v2475_v41 = vadd.f32 %v2471_v36, %v4311_v4 }
 0xbe2   : > { %2479 = vadd.xlane.f32.xlu0 %v2478_v40 }
 0xbe3   : > { %v2481_v42 = vsel %vm1751_vm9, %v2475_v41, 0.0 }
 0xbe4   : > { %2482 = vadd.xlane.f32.xlu1 %v2481_v42 }
 0xc6f   : > { %v2480_v43 = vpop.xlane.xlu0 %2479 }
 0xc70   : > { %v2485_v44 = vmul.f32 0.03125, %v2480_v43 }
 0xc71   : > { %v2483_v45 = vpop.xlane.xlu1 %2482 }
 0xc72   : > { %v2487_v46 = vsub.f32 %v2474_v38, %v2485_v44  ;;  %v2486_v47 = vmul.f32 0.03125, %v2483_v45 }
 0xc74   : > { %v2488_v48 = vsub.f32 %v2475_v41, %v2486_v47  ;;  %v2489_v51 = vmul.f32 %v2487_v46, %v2487_v46 }
 0xc76   : > { %v2491_v3 = vsel %vm1751_vm9, %v2489_v51, 0.0  ;;  %v2490_v52 = vmul.f32 %v2488_v48, %v2488_v48 }
 0xc77   : > { %2492 = vadd.xlane.f32.xlu0 %v2491_v3 }
 0xc78   : > { %v2494_v4 = vsel %vm1751_vm9, %v2490_v52, 0.0 }
 0xc7b   : > { %2495 = vadd.xlane.f32.xlu0 %v2494_v4 }
 0xd04   : > { %v2493_v49 = vpop.xlane.xlu0 %2492 }
 0xd05   : > { %v2497_v57 = vmul.f32 0.03125, %v2493_v49 }
 0xd07   : > { %v2499_v58 = vadd.f32 1e-12, %v2497_v57 }
 0xd08   : > { %v2496_v59 = vpop.xlane.xlu0 %2495 }
 0xd09   : > { %3732 = vrsqrt.f32 %v2499_v58  ;;  %v2498_v60 = vmul.f32 0.03125, %v2496_v59 }
 0xd0b   : > { %v2500_v61 = vadd.f32 1e-12, %v2498_v60 }
 0xd0d   : > { %3734 = vrsqrt.f32 %v2500_v61 }
 0xd13   : > { %v3733_v62 = vpop.eup %3732 }
 0xd14   : > { %v2503_v50 = vmul.f32 %v3733_v62, %v2487_v46 }
 0xd16   : > { %v2511_v39 = vmul.f32 %v3343_v2, %v2503_v50  ;;  %v3358_v50 = vld [vmem:[%s1415_s3] ss:$0 sm:$0xff]  ;;  %s4623_s3 = sld [smem:[#allocation41_spill]] (!%p3360_p2) }
 0xd17   : > { %v3735_v5 = vpop.eup %3734 }
 0xd18   : > { %v2504_v6 = vmul.f32 %v3735_v5, %v2488_v48  ;;  %v2519_v9 = vadd.f32 %v3344_v7, %v2511_v39  ;;  %v3359_v39 = vld [vmem:[%s1418_s20] ss:$0 sm:$0xff]  ;;  %s4625_s20 = sld [smem:[#allocation42_spill]] (!%p3360_p2) }
 0xd1a   : > { %v2512_v8 = vmul.f32 %v3343_v2, %v2504_v6 }
 0xd1c   : > { %v2520_v10 = vadd.f32 %v3344_v7, %v2512_v8  ;;  %v3744_v35 = vld [vmem:[%s4623_s3] sm:$0xff] (!%p3360_p2)  }
 0xd1e   : > { %v2521_v11 = vpack.c.bf16 %v2520_v10, %v2519_v9 }
 0xd20   : > { %3535 = vmatmul.mubr.msk.bf16.vlgmr.msra.gmra.mrb[28].mxu0 %vm1751_vm9, %v2521_v11 }
 0xdf3   : > { %v2582_v18 = vpop.f32.mrb[28].mxu0 }
 0xdf4   : > { %v2583_v19 = vadd.f32 %v3345_v17, %v2582_v18  ;;  %v3536_v20 = vpop.f32.mrb[29].mxu0  ;;  %v2776_v18 = vld [vmem:[%s4624_s27] sm:$0x3] (!%p3360_p2) }
 0xdf5   : > { %v2585_v21 = vpop.f32.mrb[30].mxu0 }
 0xdf6   : > { %v2591_v22 = vmul.f32 0.70710677, %v2583_v19  ;;  %v2586_v23 = vadd.f32 %v3345_v17, %v2585_v21  ;;  %v3537_v24 = vpop.f32.mrb[31].mxu0  ;;  %v2589_v63 = vmul.f32 0.5, %v2583_v19  ;;  %v3932_v17 = vmov (!%p3360_p2), 0.0   ;;  %v3745_v19 = vld [vmem:[%s4623_s3 + $0x8] sm:$0xff] (!%p3360_p2)  }
 0xdf7   : > { %3562 = vmatprep.mubr.msk.f32.mxu0 (!%p3360_p2), %vm3931_vm2, %v3932_v17  ;;  %3565 = vmatprep.subr.bf16.mxu1 (!%p3360_p2), %v3932_v17 }
 0xdf8   : > { %3736 = verf.f32 %v2591_v22  ;;  %v2592_v25 = vmul.f32 0.70710677, %v2586_v23  ;;  %v2590_v29 = vmul.f32 0.5, %v2586_v23  ;;  %v3362_v23 = vld [vmem:[%s4625_s20] ss:$0 sm:$0xff] (!%p3360_p2) }
 0xdfa   : > { %3738 = verf.f32 %v2592_v25 }
 0xe02   : > { %v3737_v26 = vpop.eup %3736 }
 0xe03   : > { %v2595_v27 = vadd.f32 1.0, %v3737_v26 }
 0xe04   : > { %v3739_v28 = vpop.eup %3738 }
 0xe05   : > { %v2596_v30 = vadd.f32 1.0, %v3739_v28  ;;  %v2597_v31 = vmul.f32 %v2595_v27, %v2589_v63 }
 0xe07   : > { %v2598_v32 = vmul.f32 %v2596_v30, %v2590_v29 }
 0xe09   : > { %v2599_v33 = vpack.c.bf16 %v2598_v32, %v2597_v31 }
 0xe0b   : > { %3555 = vmatmul.mubr.bf16.vlgmr.msra.gmra.mrb[20].mxu1 %v2599_v33 }
 0xe0c   : > { %3569 = vmatprep.mubr.msk.bf16.mxu1 (!%p3360_p2), %vm3931_vm2, %v3932_v17  ;;  %3566 = vmatpush3.bf16.msra.mxu1 (!%p3360_p2), %v3744_v35 }
 0xe0d   : > { %3567 = vmatprep.subr.bf16.mxu1 (!%p3360_p2), %v3932_v17 }
 0xe10   : > { %3568 = vmatpush3.bf16.msra.mxu1 (!%p3360_p2), %v3745_v19 }
 0xede   : > { %v2705_v36 = vpop.f32.mrb[20].mxu1 }
 0xedf   : > { %v2706_v37 = vadd.f32 %v3349_v34, %v2705_v36  ;;  %v3556_v38 = vpop.f32.mrb[21].mxu1  ;;  %v3747_v36 = vld [vmem:[%s4626_s4 + $0x8] sm:$0xff] (!%p3360_p2)  }
 0xee0   : > { %v2708_v40 = vpop.f32.mrb[22].mxu1 }
 0xee1   : > { %v2709_v41 = vadd.f32 %v3349_v34, %v2708_v40  ;;  %v3557_v42 = vpop.f32.mrb[23].mxu1  ;;  %v2712_v43 = vadd.f32 %v2706_v37, %v2519_v9  ;;  %v3746_v34 = vld [vmem:[%s4626_s4] sm:$0xff] (!%p3360_p2)  }
 0xee2   : > { %v3366_v42 = vld [vmem:[%s4627_s15] ss:$0 sm:$0xff] (!%p3360_p2) }
 0xee3   : > { %v2716_v44 = vsel %vm1751_vm9, %v2712_v43, 0.0  ;;  %v2713_v45 = vadd.f32 %v2709_v41, %v2520_v10 }
 0xee4   : > { %2717 = vadd.xlane.f32.xlu0 %v2716_v44  ;;  %v3367_v44 = vld [vmem:[%s4628_s1] ss:$0 sm:$0xff] (!%p3360_p2) }
 0xee5   : > { %v2719_v46 = vsel %vm1751_vm9, %v2713_v45, 0.0 }
 0xee6   : > { %2720 = vadd.xlane.f32.xlu1 %v2719_v46 }
 0xf71   : > { %v2718_v47 = vpop.xlane.xlu0 %2717 }
 0xf72   : > { %v2722_v48 = vmul.f32 0.03125, %v2718_v47 }
 0xf73   : > { %v2721_v51 = vpop.xlane.xlu1 %2720 }
 0xf74   : > { %v2724_v3 = vsub.f32 %v2712_v43, %v2722_v48  ;;  %v2723_v52 = vmul.f32 0.03125, %v2721_v51  ;;  %v3368_v51 = vld [vmem:[%s4629_s23] ss:$0 sm:$0xff] (!%p3360_p2) }
 0xf76   : > { %v2725_v4 = vsub.f32 %v2713_v45, %v2723_v52  ;;  %v2726_v53 = vmul.f32 %v2724_v3, %v2724_v3 }
 0xf78   : > { %v2728_v54 = vsel %vm1751_vm9, %v2726_v53, 0.0  ;;  %v2727_v55 = vmul.f32 %v2725_v4, %v2725_v4 }
 0xf79   : > { %2729 = vadd.xlane.f32.xlu0 %v2728_v54 }
 0xf7a   : > { %v2731_v56 = vsel %vm1751_vm9, %v2727_v55, 0.0 }
 0xf7b   : > { %2732 = vadd.xlane.f32.xlu1 %v2731_v56 }
 0xf8c   : > { %2765 = vperm.xlu1 %3697, %v4242_v1  }
 0xf8f   : > { %2760 = vperm.xlu0 %3696, %v4239_v0  }
0x1006   : > { %v2730_v49 = vpop.xlane.xlu0 %2729 }
0x1007   : > { %v2734_v57 = vmul.f32 0.03125, %v2730_v49 }
0x1008   : > { %v2733_v58 = vpop.xlane.xlu1 %2732 }
0x1009   : > { %v2736_v59 = vadd.f32 1e-12, %v2734_v57  ;;  %v2735_v60 = vmul.f32 0.03125, %v2733_v58 }
0x100b   : > { %3740 = vrsqrt.f32 %v2736_v59  ;;  %v2737_v61 = vadd.f32 1e-12, %v2735_v60 }
0x100c   : > { %v2766_v9 = vpop.permute.xlu1 %2765 }
0x100d   : > { %3742 = vrsqrt.f32 %v2737_v61 }
0x100e   : > { %v2761_v1 = vpop.permute.xlu0 %2760 }
0x1015   : > { %v3741_v62 = vpop.eup %3740 }
0x1016   : > { %v2740_v2 = vmul.f32 %v3741_v62, %v2724_v3 }
0x1017   : > { %v3743_v5 = vpop.eup %3742 }
0x1018   : > { %v2748_v6 = vmul.f32 %v3358_v50, %v2740_v2  ;;  %v2741_v7 = vmul.f32 %v3743_v5, %v2725_v4 }
0x101a   : > { %v2756_v8 = vadd.f32 %v3359_v39, %v2748_v6  ;;  %v2749_v0 = vmul.f32 %v3358_v50, %v2741_v7  ;;  %2775 = sbr.rel (%p3360_p2) target bundleno = 5101 (0x13ed), region = 192 }
0x101c   : > { %v2768_v10 = vmul.f32 %v2761_v1, %v2756_v8  ;;  %v2757_v11 = vadd.f32 %v3359_v39, %v2749_v0 }
0x101e   : > { %2770 = vst.msk [vmem:[#allocation2] sm:$0xff] %vm1751_vm9, %v2768_v10  ;;  %v2769_v12 = vmul.f32 %v2766_v9, %v2757_v11 }
0x1020   : > { %2771 = vst.msk [vmem:[#allocation2 + $0x8] sm:$0xff] %vm1751_vm9, %v2769_v12 }
0x1025   : > { %v2777_v13 = vld [vmem:[#allocation2] sm:$0xff] }
0x1027   : > { %v2778_v14 = vld [vmem:[#allocation2 + $0x8] sm:$0xff] }
0x1028   : > { %v3582_v16 = vpack.c.bf16 %v2778_v14, %v2777_v13 }
0x102a   : > { %3583 = vmatpush3.bf16.msra.mxu0 %v3582_v16 }
0x102b   : > { %3573 = vmatprep.subr.bf16.mxu0 %v3932_v17 }
0x102d   : > { %3563 = vmatmul.mubr.msk.f32.vlgmr.msra.gmra.mrb[0].mxu0 %vm1934_vm10, %v2776_v18 }
0x102e   : > { %3577 = vmatprep.mubr.msk.bf16.mxu0 %vm3931_vm2, %v3932_v17  ;;  %3574 = vmatpush3.bf16.msra.mxu0 %v3746_v34 }
0x102f   : > { %3575 = vmatprep.subr.bf16.mxu0 %v3932_v17 }
0x1032   : > { %3576 = vmatpush3.bf16.msra.mxu0 %v3747_v36 }
0x1100   : > { %v2848_v20 = vpop.f32.mrb[0].mxu0 }
0x1101   : > { %v2852_v21 = vpack.c.bf16 %v2848_v20, %v2848_v20  ;;  %v3564_v22 = vpop.f32.mrb[1].mxu0 }
0x1103   : > { %3570 = vmatmul.mubr.msk.bf16.vlgmr.msra.gmra.mrb[0].mxu1 %vm1751_vm9, %v2852_v21 }
0x11d6   : > { %v2913_v24 = vpop.f32.mrb[0].mxu1 }
0x11d7   : > { %v2914_v25 = vadd.f32 %v3362_v23, %v2913_v24  ;;  %v3571_v26 = vpop.f32.mrb[1].mxu1 }
0x11d8   : > { %v2916_v27 = vpop.f32.mrb[2].mxu1 }
0x11d9   : > { %v3572_v28 = vpop.f32.mrb[3].mxu1  ;;  %v2922_v63 = vsel %vm2921_vm3, %v2914_v25, 0.0 }
0x11da   : > { %2923 = vadd.xlane.f32.xlu0 %v2922_v63 }
0x1267   : > { %v2924_v29 = vpop.xlane.xlu0 %2923 }
0x1268   : > { %v2925_v30 = vmul.f32 0.03125, %v2924_v29 }
0x126a   : > { %v2926_v31 = vsub.f32 %v2914_v25, %v2925_v30 }
0x126c   : > { %v2927_v32 = vmul.f32 %v2926_v31, %v2926_v31 }
0x126e   : > { %v2928_v33 = vsel %vm2921_vm3, %v2927_v32, 0.0 }
0x126f   : > { %2929 = vadd.xlane.f32.xlu0 %v2928_v33 }
0x12fc   : > { %v2930_v37 = vpop.xlane.xlu0 %2929 }
0x12fd   : > { %v2931_v38 = vmul.f32 0.03125, %v2930_v37 }
0x12ff   : > { %v2932_v40 = vadd.f32 1e-12, %v2931_v38 }
0x1301   : > { %3748 = vrsqrt.f32 %v2932_v40 }
0x130b   : > { %v3749_v41 = vpop.eup %3748 }
0x130c   : > { %v2934_v43 = vmul.f32 %v3749_v41, %v2926_v31 }
0x130e   : > { %v2941_v45 = vmul.f32 %v3366_v42, %v2934_v43 }
0x1310   : > { %v2948_v46 = vadd.f32 %v3367_v44, %v2941_v45 }
0x1312   : > { %v2949_v47 = vmax.f32 %v2948_v46, 0.0 }
0x1314   : > { %v2950_v48 = vpack.c.bf16 %v2949_v47, %v2949_v47 }
0x1316   : > { %3578 = vmatmul.mubr.msk.bf16.vlgmr.msra.gmra.mrb[4].mxu0 %vm1751_vm9, %v2950_v48 }
0x13e9   : > { %v3011_v3 = vpop.f32.mrb[4].mxu0 }
0x13ea   : > { %v3012_v52 = vadd.f32 %v3368_v51, %v3011_v3  ;;  %v3579_v4 = vpop.f32.mrb[5].mxu0 }
0x13eb   : > { %v3014_v53 = vpop.f32.mrb[6].mxu0 }
0x13ec   : > { %3018 = vst.msk [vmem:[#allocation10] sm:$0x3] %vm3017_vm4, %v3012_v52  ;;  %v3580_v54 = vpop.f32.mrb[7].mxu0 }
0x13ed PF: > { %p3616_p3 = scmp.eq.s32.totalorder %s4140_s16, 1  ;;  %s3933_s10 = smov [#allocation10]  }
0x13ee   : > { %s3026_s28 = sshll.u32 %s3933_s10, 4  ;;  %s3027_s28 = int_to_ptr.vmem [resolvable:$true] %s3026_s28 }
0x13ef   : > { %s3834_s22 = scalar_lea.vmem %s3027_s28, 32  ;;  %p3841_p1 = scmp.lt.s32.totalorder %s3027_s28, %s3027_s28 }
0x13f0   : > { %p3835_p4 = scmp.ne.s32.totalorder %s3027_s28, %s3834_s22  ;;  %p3842_p5 = scmp.lt.s32.totalorder %s3834_s22, %s3834_s22 }
0x13f2   : > { %p3836_p13 = pnand %p3835_p4, %p3616_p3  ;;  %p3843_p7 = por %p3842_p5, %p3841_p1 }
0x13f4   : > { %p3837_p0 = pneg %p3836_p13 }
0x13f6   : > { %p3844_p9 = pnand %p3843_p7, %p3837_p0 }
0x13f8   : > { %3847 = shalt.err (!%p3844_p9)
}
0x13f9   : > { %s4630_s7 = sld [smem:[#allocation47_spill]] }
0x13ff   : > { %s3848_s11 = scalar_lea.hbm %s4630_s7, 32 }
0x1400   : > { %p3849_p8 = scmp.ne.s32.totalorder %s4630_s7, %s3848_s11  ;;  %p3854_p6 = scmp.lt.u32.totalorder %s3848_s11, %s4630_s7 }
0x1402   : > { %p3850_p10 = pnand %p3849_p8, %p3616_p3 }
0x1404   : > { %p3851_p11 = pneg %p3850_p10 }
0x1406   : > { %p3856_p12 = pnand %p3854_p6, %p3851_p11 }
0x1408   : > { %3859 = shalt.err (!%p3856_p12)
}
0x1409   : > { %3597 = dma.vmem_to_hbm [thread:$0]  (%p3616_p3), %s3027_s28, 32, %s4630_s7, [#allocation6]  }
0x140a   : > { %3873 = dma.done.wait (%p3616_p3), [#allocation6], 32  }
0x140b   : > { %3875 = vsyncadd (%p3616_p3), [#allocation6], 4294967264 }
0x140c PF: > { %s4631_s18 = sld [smem:[#allocation48_spill]] }
0x1412   : > { %s90_s15 = sadd.s32 1, %s4631_s18  }
0x1413   : > { %p87_p2 = scmp.ge.s32.totalorder %s90_s15, 4  }
0x1415   :  { %89 = sbr.rel (!%p87_p2) target bundleno = 88 (0x58), region = 303 }
0x141c   :  { %3039 = vsyncpa [#allocation5], 1 }
0x141d   :  { %3041 = vsyncpa [#allocation5 + $0x1], 1 }
0x141e   :  { %3042 = vsyncpa [#allocation8], 1 }
0x141f   :  { %3043 = vsyncpa [#allocation6], 1 }
0x1420   :  { %3045 = vsyncpa [#allocation6 + $0x1], 1 }

</bundles_post_ra>
